<compile_context>
chip_gen: v5e
topology: v5e:2x2
jax: 0.10.0
libtpu: 0.0.40
codegen_flags: <defaults>
</compile_context>

<pallas_src>
import functools

import jax
import jax.numpy as jnp
from jax import lax
from jax.experimental import pallas as pl
from jax.experimental.pallas import tpu as pltpu

KERNEL_SIZE = 7
PAD = (KERNEL_SIZE - 1) // 2


def _lane_chunks(hw, max_chunk=1024):
    """Static list of (start, size) lane chunks covering [0, hw)."""
    chunks = []
    start = 0
    while start < hw:
        size = min(max_chunk, hw - start)
        chunks.append((start, size))
        start += size
    return chunks


def _largest_divisor_leq(n, cap):
    for d in range(min(n, cap), 0, -1):
        if n % d == 0:
            return d
    return 1


def spatial_attention_kernel(x_ref, w_ref, rowm_ref, colm_ref, o_ref,
                             stk_ref, attn_ref, *, width):
    # x_ref    : (NB, C, HW)   input block, native dtype, lane-dense over HW
    # w_ref    : (2*K*K,)      f32 conv taps in SMEM (scalar reads)
    # rowm_ref : (K, HW)       f32 {0,1} row-validity mask per kh offset
    # colm_ref : (K, HW)       f32 {0,1} col-validity mask per kw offset
    # o_ref    : (NB, C, HW)   output block, native dtype
    # stk_ref  : (2*NB, HW)    f32 scratch: rows [0:NB] = channel mean,
    #                          rows [NB:2NB] = channel max
    # attn_ref : (NB, HW)      scratch for the attention map, native dtype
    nb, c_dim, hw = x_ref.shape
    k = KERNEL_SIZE
    kk = k * k

    itemsize = jnp.dtype(x_ref.dtype).itemsize
    g = _largest_divisor_leq(c_dim, 16 if itemsize == 2 else 8)
    ngroups = c_dim // g
    chunks = _lane_chunks(hw)
    inv_c = 1.0 / c_dim

    # ---- phase 1: fused channel mean/max ------------------------------------
    # Lane chunks outer (accumulators stay in vregs), sublane-dense channel
    # groups inner via fori_loop, one cross-sublane reduce per chunk.
    for b in range(nb):
        for (start, size) in chunks:
            x0 = x_ref[b, pl.ds(0, g), pl.ds(start, size)].astype(jnp.float32)

            def red_body(gi, carry, _b=b, _start=start, _size=size):
                cs, cm = carry
                off = pl.multiple_of(gi * g, g)
                xg = x_ref[_b, pl.ds(off, g),
                           pl.ds(_start, _size)].astype(jnp.float32)
                return cs + xg, jnp.maximum(cm, xg)

            if ngroups > 1:
                cs, cm = lax.fori_loop(1, ngroups, red_body, (x0, x0))
            else:
                cs, cm = x0, x0

            csum = jnp.sum(cs, axis=0, keepdims=True)          # (1, size)
            cmax = jnp.max(cm, axis=0, keepdims=True)          # (1, size)
            stk_ref[pl.ds(b, 1), pl.ds(start, size)] = csum * inv_c
            stk_ref[pl.ds(nb + b, 1), pl.ds(start, size)] = cmax

    # ---- phase 2: separable 7x7 conv (2 -> 1, zero pad 3) + sigmoid ---------
    # Cyclic rolls over the flat HW axis; wrapped / out-of-image taps are zeroed
    # by the column/row masks, reproducing Conv2d zero padding exactly.
    stk = stk_ref[...]                                         # (2*NB, HW) f32

    cs_a = []                                                  # mean planes per kw
    cs_m = []                                                  # max planes per kw
    for kw in range(k):
        dw = kw - PAD
        shift = (-dw) % hw
        s = pltpu.roll(stk, shift=shift, axis=1) if shift else stk
        if dw != 0:
            s = s * colm_ref[kw:kw + 1, :]                     # mask once per shift
        cs_a.append(s[0:nb, :])
        cs_m.append(s[nb:2 * nb, :])

    acc = jnp.zeros((nb, hw), jnp.float32)
    for kh in range(k):
        dh = kh - PAD
        inner = None
        for kw in range(k):
            w_avg = w_ref[kh * k + kw]                         # scalar from SMEM
            w_max = w_ref[kk + kh * k + kw]                    # scalar from SMEM
            t = cs_a[kw] * w_avg + cs_m[kw] * w_max            # VPU work
            inner = t if inner is None else inner + t
        shift = (-(dh * width)) % hw
        if shift:
            inner = pltpu.roll(inner, shift=shift, axis=1)     # one roll per kh
        acc = acc + inner * rowm_ref[kh:kh + 1, :]

    attn_ref[...] = jax.nn.sigmoid(acc).astype(attn_ref.dtype)

    # ---- phase 3: broadcast multiply over channels ---------------------------
    # attn is kept in the input dtype (bf16 multiply path on v6e/v7x); the
    # sublane broadcast is hoisted out of the channel-group loop.
    for b in range(nb):
        for (start, size) in chunks:
            a = attn_ref[pl.ds(b, 1), pl.ds(start, size)]      # (1, size) native
            ab = jnp.broadcast_to(a, (g, size))                # hoisted broadcast

            def mul_body(gi, carry, _b=b, _start=start, _size=size, _ab=ab):
                off = pl.multiple_of(gi * g, g)
                xg = x_ref[_b, pl.ds(off, g), pl.ds(_start, _size)]
                o_ref[_b, pl.ds(off, g), pl.ds(_start, _size)] = (
                    xg * _ab).astype(o_ref.dtype)
                return carry

            lax.fori_loop(0, ngroups, mul_body, 0)


def _pick_batch_block(n, per_batch_bytes, target_bytes):
    """Largest divisor of n whose block fits target_bytes; keep >=2 grid steps
    when possible so megacore sharding and the DMA pipeline get work."""
    nb = 1
    for d in range(1, n + 1):
        if n % d == 0 and d * per_batch_bytes <= target_bytes:
            nb = d
    if nb == n and n > 1:
        for d in range(n // 2, 0, -1):
            if n % d == 0:
                nb = d
                break
    return nb


def spatial_attention(x, weight):
    # x: (N, C, H, W) in its native dtype (f32 or bf16)
    # weight: (1, 2, K, K) f32, PyTorch Conv2d layout (O, I, kH, kW)
    N, C, H, W = x.shape
    K = KERNEL_SIZE
    HW = H * W

    w_flat = weight.reshape(2 * K * K).astype(jnp.float32)

    # Precompute {0,1} edge masks at trace time (constants outside the kernel):
    # rowm[kh, hw] = 1 iff 0 <= (hw // W) + (kh - PAD) < H
    # colm[kw, hw] = 1 iff 0 <= (hw %  W) + (kw - PAD) < W
    hw_idx = jnp.arange(HW, dtype=jnp.int32)
    row = hw_idx // W
    col = hw_idx % W
    rowm = jnp.stack(
        [((row + (kh - PAD) >= 0) & (row + (kh - PAD) < H)) for kh in range(K)]
    ).astype(jnp.float32)                                       # (K, HW)
    colm = jnp.stack(
        [((col + (kw - PAD) >= 0) & (col + (kw - PAD) < W)) for kw in range(K)]
    ).astype(jnp.float32)                                       # (K, HW)

    # Lane-dense view: last dim H*W.
    x2 = x.reshape(N, C, HW)

    itemsize = jnp.dtype(x.dtype).itemsize
    per_batch_bytes = C * HW * itemsize

    # Generation-aware VMEM budget: 75% of physical VMEM (96 MiB on v5e/v6e,
    # 48 MiB on v7x); conservative 48 MiB fallback if the query is unavailable.
    try:
        vmem_cap = int(pltpu.get_tpu_info().vmem_capacity_bytes)
    except Exception:
        vmem_cap = 64 * 1024 * 1024
    usable = (vmem_cap * 3) // 4

    mask_bytes = 2 * K * HW * 4
    # Double-buffered input + output blocks => ~4x block bytes in flight.
    max_block_bytes = max(1, (usable - mask_bytes - (4 << 20)) // 4)
    target_block_bytes = min(8 * 1024 * 1024, max_block_bytes)
    NB = _pick_batch_block(N, per_batch_bytes, target_block_bytes)

    block_bytes = NB * per_batch_bytes
    scratch_bytes = 2 * NB * HW * 4 + NB * HW * itemsize
    vmem_need = 4 * block_bytes + 2 * mask_bytes + scratch_bytes + (4 << 20)
    vmem_limit = int(min(usable, max(32 * 1024 * 1024, vmem_need)))

    grid = (N // NB,)
    # TODO(synk): for very large C*H*W per batch element (v7x 64 MiB VMEM), add an
    # H-chunk grid axis with a +/-3-row halo (manual DMA) instead of whole-HW blocks.

    out = pl.pallas_call(
        functools.partial(spatial_attention_kernel, width=W),
        out_shape=jax.ShapeDtypeStruct((N, C, HW), x.dtype),
        grid_spec=pltpu.PrefetchScalarGridSpec(
            num_scalar_prefetch=0,
            grid=grid,
            in_specs=[
                pl.BlockSpec((NB, C, HW), lambda n: (n, 0, 0)),
                pl.BlockSpec(memory_space=pltpu.MemorySpace.SMEM),   # conv taps
                pl.BlockSpec((K, HW), lambda n: (0, 0)),             # row masks
                pl.BlockSpec((K, HW), lambda n: (0, 0)),             # col masks
            ],
            out_specs=pl.BlockSpec((NB, C, HW), lambda n: (n, 0, 0)),
            scratch_shapes=[
                pltpu.VMEM((2 * NB, HW), jnp.float32),               # [mean; max]
                pltpu.VMEM((NB, HW), x.dtype),                       # attention map
            ],
        ),
        compiler_params=pltpu.CompilerParams(
            dimension_semantics=("parallel",),
            vmem_limit_bytes=vmem_limit,
        ),
    )(x2, w_flat, rowm, colm)

    return out.reshape(N, C, H, W)


def spatial_attention_ref(x, weight):
    # Pure-JAX reference matching the PyTorch module.
    xf = x.astype(jnp.float32)
    avg_out = jnp.mean(xf, axis=1, keepdims=True)
    max_out = jnp.max(xf, axis=1, keepdims=True)
    out = jnp.concatenate([avg_out, max_out], axis=1)            # (N, 2, H, W)
    out = lax.conv_general_dilated(
        out, weight.astype(jnp.float32),
        window_strides=(1, 1),
        padding=[(PAD, PAD), (PAD, PAD)],
        dimension_numbers=("NCHW", "OIHW", "NCHW"),
    )                                                             # (N, 1, H, W)
    return (jax.nn.sigmoid(out) * xf).astype(x.dtype)


if __name__ == "__main__":
    key = jax.random.PRNGKey(0)
    kx, kw = jax.random.split(key)

    N, C, H, W = 2, 4, 16, 16
    x = jax.random.normal(kx, (N, C, H, W), dtype=jnp.float32)
    # Deterministic Conv2d(2, 1, 7, bias=False) weight, PyTorch layout (O, I, kH, kW).
    fan_in = 2 * KERNEL_SIZE * KERNEL_SIZE
    bound = 1.0 / (fan_in ** 0.5)
    weight = jax.random.uniform(
        kw, (1, 2, KERNEL_SIZE, KERNEL_SIZE),
        minval=-bound, maxval=bound, dtype=jnp.float32,
    )

    out = spatial_attention(x, weight)
    out = jax.block_until_ready(out)

    ref = spatial_attention_ref(x, weight)
    assert out.shape == (N, C, H, W)
    assert jnp.allclose(out, ref, atol=1e-5, rtol=1e-5), "mismatch vs reference"

    print("KERNEL_OK")
</pallas_src>

<mosaic_0001>
module attributes {stable_mosaic.version = 11 : i64} {
  func.func @spatial_attention_kernel(%arg0: i32, %arg1: memref<1x4x256xf32, #tpu.memory_space<vmem>>, %arg2: memref<98xf32, #tpu.memory_space<smem>>, %arg3: memref<7x256xf32, #tpu.memory_space<vmem>>, %arg4: memref<7x256xf32, #tpu.memory_space<vmem>>, %arg5: memref<1x4x256xf32, #tpu.memory_space<vmem>>, %arg6: memref<2x256xf32, #tpu.memory_space<vmem>>, %arg7: memref<1x256xf32, #tpu.memory_space<vmem>>) attributes {dimension_semantics = [#tpu.dimension_semantics<parallel>], iteration_bounds = array<i64: 2>, scalar_prefetch = 0 : i64, scratch_operands = 2 : i64, tpu.core_type = #tpu.core_type<tc>, window_params = [{transform_indices = @transform_0, window_bounds = array<i64: 1, 4, 256>}, {transform_indices = @transform_1, window_bounds = array<i64: 98>}, {pipeline_mode = #tpu.pipeline_mode<synchronous>, transform_indices = @transform_2, window_bounds = array<i64: 7, 256>}, {pipeline_mode = #tpu.pipeline_mode<synchronous>, transform_indices = @transform_3, window_bounds = array<i64: 7, 256>}, {transform_indices = @transform_4, window_bounds = array<i64: 1, 4, 256>}]} {
    %c0 = arith.constant 0 : index
    %c0_0 = arith.constant 0 : index
    %c0_1 = arith.constant 0 : index
    %0 = vector.load %arg1[%c0, %c0_0, %c0_1] : memref<1x4x256xf32, #tpu.memory_space<vmem>>, vector<1x4x256xf32>
    %1 = vector.shape_cast %0 : vector<1x4x256xf32> to vector<4x256xf32>
    %cst = arith.constant dense<0.000000e+00> : vector<256xf32>
    %2 = vector.multi_reduction <add>, %1, %cst [0] : vector<4x256xf32> to vector<256xf32>
    %3 = vector.shape_cast %2 : vector<256xf32> to vector<1x256xf32>
    %cst_2 = arith.constant dense<0xFF800000> : vector<256xf32>
    %4 = vector.multi_reduction <maximumf>, %1, %cst_2 [0] : vector<4x256xf32> to vector<256xf32>
    %5 = vector.shape_cast %4 : vector<256xf32> to vector<1x256xf32>
    %cst_3 = arith.constant 2.500000e-01 : f32
    %6 = vector.broadcast %cst_3 : f32 to vector<1x256xf32>
    %7 = arith.mulf %3, %6 : vector<1x256xf32>
    %c0_4 = arith.constant 0 : index
    %c0_5 = arith.constant 0 : index
    %8 = vector.load %arg6[%c0_4, %c0_5] : memref<2x256xf32, #tpu.memory_space<vmem>>, vector<1x256xf32>
    tpu.vector_store %arg6[%c0_4, %c0_5], %7 {strides = array<i32>} : memref<2x256xf32, #tpu.memory_space<vmem>>, vector<1x256xf32>,
    %c1 = arith.constant 1 : index
    %c0_6 = arith.constant 0 : index
    %9 = vector.load %arg6[%c1, %c0_6] : memref<2x256xf32, #tpu.memory_space<vmem>>, vector<1x256xf32>
    tpu.vector_store %arg6[%c1, %c0_6], %5 {strides = array<i32>} : memref<2x256xf32, #tpu.memory_space<vmem>>, vector<1x256xf32>,
    %c0_7 = arith.constant 0 : index
    %c0_8 = arith.constant 0 : index
    %10 = vector.load %arg6[%c0_7, %c0_8] : memref<2x256xf32, #tpu.memory_space<vmem>>, vector<2x256xf32>
    %c3_i32 = arith.constant 3 : i32
    %11 = tpu.dynamic_rotate %10 by %c3_i32 dim 1 : vector<2x256xf32>, i32 -> vector<2x256xf32>
    %c0_9 = arith.constant 0 : index
    %c0_10 = arith.constant 0 : index
    %12 = vector.load %arg4[%c0_9, %c0_10] : memref<7x256xf32, #tpu.memory_space<vmem>>, vector<1x256xf32>
    %13 = vector.broadcast %12 : vector<1x256xf32> to vector<2x256xf32>
    %14 = arith.mulf %11, %13 : vector<2x256xf32>
    %15 = vector.extract_strided_slice %14 {offsets = [0, 0], sizes = [1, 256], strides = [1, 1]} : vector<2x256xf32> to vector<1x256xf32>
    %16 = vector.extract_strided_slice %14 {offsets = [1, 0], sizes = [1, 256], strides = [1, 1]} : vector<2x256xf32> to vector<1x256xf32>
    %c2_i32 = arith.constant 2 : i32
    %17 = tpu.dynamic_rotate %10 by %c2_i32 dim 1 : vector<2x256xf32>, i32 -> vector<2x256xf32>
    %c1_11 = arith.constant 1 : index
    %c0_12 = arith.constant 0 : index
    %18 = vector.load %arg4[%c1_11, %c0_12] : memref<7x256xf32, #tpu.memory_space<vmem>>, vector<1x256xf32>
    %19 = vector.broadcast %18 : vector<1x256xf32> to vector<2x256xf32>
    %20 = arith.mulf %17, %19 : vector<2x256xf32>
    %21 = vector.extract_strided_slice %20 {offsets = [0, 0], sizes = [1, 256], strides = [1, 1]} : vector<2x256xf32> to vector<1x256xf32>
    %22 = vector.extract_strided_slice %20 {offsets = [1, 0], sizes = [1, 256], strides = [1, 1]} : vector<2x256xf32> to vector<1x256xf32>
    %c1_i32 = arith.constant 1 : i32
    %23 = tpu.dynamic_rotate %10 by %c1_i32 dim 1 : vector<2x256xf32>, i32 -> vector<2x256xf32>
    %c2 = arith.constant 2 : index
    %c0_13 = arith.constant 0 : index
    %24 = vector.load %arg4[%c2, %c0_13] : memref<7x256xf32, #tpu.memory_space<vmem>>, vector<1x256xf32>
    %25 = vector.broadcast %24 : vector<1x256xf32> to vector<2x256xf32>
    %26 = arith.mulf %23, %25 : vector<2x256xf32>
    %27 = vector.extract_strided_slice %26 {offsets = [0, 0], sizes = [1, 256], strides = [1, 1]} : vector<2x256xf32> to vector<1x256xf32>
    %28 = vector.extract_strided_slice %26 {offsets = [1, 0], sizes = [1, 256], strides = [1, 1]} : vector<2x256xf32> to vector<1x256xf32>
    %29 = vector.extract_strided_slice %10 {offsets = [0, 0], sizes = [1, 256], strides = [1, 1]} : vector<2x256xf32> to vector<1x256xf32>
    %30 = vector.extract_strided_slice %10 {offsets = [1, 0], sizes = [1, 256], strides = [1, 1]} : vector<2x256xf32> to vector<1x256xf32>
    %c255_i32 = arith.constant 255 : i32
    %31 = tpu.dynamic_rotate %10 by %c255_i32 dim 1 : vector<2x256xf32>, i32 -> vector<2x256xf32>
    %c4 = arith.constant 4 : index
    %c0_14 = arith.constant 0 : index
    %32 = vector.load %arg4[%c4, %c0_14] : memref<7x256xf32, #tpu.memory_space<vmem>>, vector<1x256xf32>
    %33 = vector.broadcast %32 : vector<1x256xf32> to vector<2x256xf32>
    %34 = arith.mulf %31, %33 : vector<2x256xf32>
    %35 = vector.extract_strided_slice %34 {offsets = [0, 0], sizes = [1, 256], strides = [1, 1]} : vector<2x256xf32> to vector<1x256xf32>
    %36 = vector.extract_strided_slice %34 {offsets = [1, 0], sizes = [1, 256], strides = [1, 1]} : vector<2x256xf32> to vector<1x256xf32>
    %c254_i32 = arith.constant 254 : i32
    %37 = tpu.dynamic_rotate %10 by %c254_i32 dim 1 : vector<2x256xf32>, i32 -> vector<2x256xf32>
    %c5 = arith.constant 5 : index
    %c0_15 = arith.constant 0 : index
    %38 = vector.load %arg4[%c5, %c0_15] : memref<7x256xf32, #tpu.memory_space<vmem>>, vector<1x256xf32>
    %39 = vector.broadcast %38 : vector<1x256xf32> to vector<2x256xf32>
    %40 = arith.mulf %37, %39 : vector<2x256xf32>
    %41 = vector.extract_strided_slice %40 {offsets = [0, 0], sizes = [1, 256], strides = [1, 1]} : vector<2x256xf32> to vector<1x256xf32>
    %42 = vector.extract_strided_slice %40 {offsets = [1, 0], sizes = [1, 256], strides = [1, 1]} : vector<2x256xf32> to vector<1x256xf32>
    %c253_i32 = arith.constant 253 : i32
    %43 = tpu.dynamic_rotate %10 by %c253_i32 dim 1 : vector<2x256xf32>, i32 -> vector<2x256xf32>
    %c6 = arith.constant 6 : index
    %c0_16 = arith.constant 0 : index
    %44 = vector.load %arg4[%c6, %c0_16] : memref<7x256xf32, #tpu.memory_space<vmem>>, vector<1x256xf32>
    %45 = vector.broadcast %44 : vector<1x256xf32> to vector<2x256xf32>
    %46 = arith.mulf %43, %45 : vector<2x256xf32>
    %47 = vector.extract_strided_slice %46 {offsets = [0, 0], sizes = [1, 256], strides = [1, 1]} : vector<2x256xf32> to vector<1x256xf32>
    %48 = vector.extract_strided_slice %46 {offsets = [1, 0], sizes = [1, 256], strides = [1, 1]} : vector<2x256xf32> to vector<1x256xf32>
    %cst_17 = arith.constant 0.000000e+00 : f32
    %49 = vector.broadcast %cst_17 : f32 to vector<1x256xf32>
    %c0_18 = arith.constant 0 : index
    %50 = memref.load %arg2[%c0_18] : memref<98xf32, #tpu.memory_space<smem>>
    %c49 = arith.constant 49 : index
    %51 = memref.load %arg2[%c49] : memref<98xf32, #tpu.memory_space<smem>>
    %52 = vector.broadcast %50 : f32 to vector<1x256xf32>
    %53 = arith.mulf %15, %52 : vector<1x256xf32>
    %54 = vector.broadcast %51 : f32 to vector<1x256xf32>
    %55 = arith.mulf %16, %54 : vector<1x256xf32>
    %56 = arith.addf %53, %55 : vector<1x256xf32>
    %c1_19 = arith.constant 1 : index
    %57 = memref.load %arg2[%c1_19] : memref<98xf32, #tpu.memory_space<smem>>
    %c50 = arith.constant 50 : index
    %58 = memref.load %arg2[%c50] : memref<98xf32, #tpu.memory_space<smem>>
    %59 = vector.broadcast %57 : f32 to vector<1x256xf32>
    %60 = arith.mulf %21, %59 : vector<1x256xf32>
    %61 = vector.broadcast %58 : f32 to vector<1x256xf32>
    %62 = arith.mulf %22, %61 : vector<1x256xf32>
    %63 = arith.addf %60, %62 : vector<1x256xf32>
    %64 = arith.addf %56, %63 : vector<1x256xf32>
    %c2_20 = arith.constant 2 : index
    %65 = memref.load %arg2[%c2_20] : memref<98xf32, #tpu.memory_space<smem>>
    %c51 = arith.constant 51 : index
    %66 = memref.load %arg2[%c51] : memref<98xf32, #tpu.memory_space<smem>>
    %67 = vector.broadcast %65 : f32 to vector<1x256xf32>
    %68 = arith.mulf %27, %67 : vector<1x256xf32>
    %69 = vector.broadcast %66 : f32 to vector<1x256xf32>
    %70 = arith.mulf %28, %69 : vector<1x256xf32>
    %71 = arith.addf %68, %70 : vector<1x256xf32>
    %72 = arith.addf %64, %71 : vector<1x256xf32>
    %c3 = arith.constant 3 : index
    %73 = memref.load %arg2[%c3] : memref<98xf32, #tpu.memory_space<smem>>
    %c52 = arith.constant 52 : index
    %74 = memref.load %arg2[%c52] : memref<98xf32, #tpu.memory_space<smem>>
    %75 = vector.broadcast %73 : f32 to vector<1x256xf32>
    %76 = arith.mulf %29, %75 : vector<1x256xf32>
    %77 = vector.broadcast %74 : f32 to vector<1x256xf32>
    %78 = arith.mulf %30, %77 : vector<1x256xf32>
    %79 = arith.addf %76, %78 : vector<1x256xf32>
    %80 = arith.addf %72, %79 : vector<1x256xf32>
    %c4_21 = arith.constant 4 : index
    %81 = memref.load %arg2[%c4_21] : memref<98xf32, #tpu.memory_space<smem>>
    %c53 = arith.constant 53 : index
    %82 = memref.load %arg2[%c53] : memref<98xf32, #tpu.memory_space<smem>>
    %83 = vector.broadcast %81 : f32 to vector<1x256xf32>
    %84 = arith.mulf %35, %83 : vector<1x256xf32>
    %85 = vector.broadcast %82 : f32 to vector<1x256xf32>
    %86 = arith.mulf %36, %85 : vector<1x256xf32>
    %87 = arith.addf %84, %86 : vector<1x256xf32>
    %88 = arith.addf %80, %87 : vector<1x256xf32>
    %c5_22 = arith.constant 5 : index
    %89 = memref.load %arg2[%c5_22] : memref<98xf32, #tpu.memory_space<smem>>
    %c54 = arith.constant 54 : index
    %90 = memref.load %arg2[%c54] : memref<98xf32, #tpu.memory_space<smem>>
    %91 = vector.broadcast %89 : f32 to vector<1x256xf32>
    %92 = arith.mulf %41, %91 : vector<1x256xf32>
    %93 = vector.broadcast %90 : f32 to vector<1x256xf32>
    %94 = arith.mulf %42, %93 : vector<1x256xf32>
    %95 = arith.addf %92, %94 : vector<1x256xf32>
    %96 = arith.addf %88, %95 : vector<1x256xf32>
    %c6_23 = arith.constant 6 : index
    %97 = memref.load %arg2[%c6_23] : memref<98xf32, #tpu.memory_space<smem>>
    %c55 = arith.constant 55 : index
    %98 = memref.load %arg2[%c55] : memref<98xf32, #tpu.memory_space<smem>>
    %99 = vector.broadcast %97 : f32 to vector<1x256xf32>
    %100 = arith.mulf %47, %99 : vector<1x256xf32>
    %101 = vector.broadcast %98 : f32 to vector<1x256xf32>
    %102 = arith.mulf %48, %101 : vector<1x256xf32>
    %103 = arith.addf %100, %102 : vector<1x256xf32>
    %104 = arith.addf %96, %103 : vector<1x256xf32>
    %c48_i32 = arith.constant 48 : i32
    %105 = tpu.dynamic_rotate %104 by %c48_i32 dim 1 : vector<1x256xf32>, i32 -> vector<1x256xf32>
    %c0_24 = arith.constant 0 : index
    %c0_25 = arith.constant 0 : index
    %106 = vector.load %arg3[%c0_24, %c0_25] : memref<7x256xf32, #tpu.memory_space<vmem>>, vector<1x256xf32>
    %107 = arith.mulf %105, %106 : vector<1x256xf32>
    %108 = arith.addf %49, %107 : vector<1x256xf32>
    %c7 = arith.constant 7 : index
    %109 = memref.load %arg2[%c7] : memref<98xf32, #tpu.memory_space<smem>>
    %c56 = arith.constant 56 : index
    %110 = memref.load %arg2[%c56] : memref<98xf32, #tpu.memory_space<smem>>
    %111 = vector.broadcast %109 : f32 to vector<1x256xf32>
    %112 = arith.mulf %15, %111 : vector<1x256xf32>
    %113 = vector.broadcast %110 : f32 to vector<1x256xf32>
    %114 = arith.mulf %16, %113 : vector<1x256xf32>
    %115 = arith.addf %112, %114 : vector<1x256xf32>
    %c8 = arith.constant 8 : index
    %116 = memref.load %arg2[%c8] : memref<98xf32, #tpu.memory_space<smem>>
    %c57 = arith.constant 57 : index
    %117 = memref.load %arg2[%c57] : memref<98xf32, #tpu.memory_space<smem>>
    %118 = vector.broadcast %116 : f32 to vector<1x256xf32>
    %119 = arith.mulf %21, %118 : vector<1x256xf32>
    %120 = vector.broadcast %117 : f32 to vector<1x256xf32>
    %121 = arith.mulf %22, %120 : vector<1x256xf32>
    %122 = arith.addf %119, %121 : vector<1x256xf32>
    %123 = arith.addf %115, %122 : vector<1x256xf32>
    %c9 = arith.constant 9 : index
    %124 = memref.load %arg2[%c9] : memref<98xf32, #tpu.memory_space<smem>>
    %c58 = arith.constant 58 : index
    %125 = memref.load %arg2[%c58] : memref<98xf32, #tpu.memory_space<smem>>
    %126 = vector.broadcast %124 : f32 to vector<1x256xf32>
    %127 = arith.mulf %27, %126 : vector<1x256xf32>
    %128 = vector.broadcast %125 : f32 to vector<1x256xf32>
    %129 = arith.mulf %28, %128 : vector<1x256xf32>
    %130 = arith.addf %127, %129 : vector<1x256xf32>
    %131 = arith.addf %123, %130 : vector<1x256xf32>
    %c10 = arith.constant 10 : index
    %132 = memref.load %arg2[%c10] : memref<98xf32, #tpu.memory_space<smem>>
    %c59 = arith.constant 59 : index
    %133 = memref.load %arg2[%c59] : memref<98xf32, #tpu.memory_space<smem>>
    %134 = vector.broadcast %132 : f32 to vector<1x256xf32>
    %135 = arith.mulf %29, %134 : vector<1x256xf32>
    %136 = vector.broadcast %133 : f32 to vector<1x256xf32>
    %137 = arith.mulf %30, %136 : vector<1x256xf32>
    %138 = arith.addf %135, %137 : vector<1x256xf32>
    %139 = arith.addf %131, %138 : vector<1x256xf32>
    %c11 = arith.constant 11 : index
    %140 = memref.load %arg2[%c11] : memref<98xf32, #tpu.memory_space<smem>>
    %c60 = arith.constant 60 : index
    %141 = memref.load %arg2[%c60] : memref<98xf32, #tpu.memory_space<smem>>
    %142 = vector.broadcast %140 : f32 to vector<1x256xf32>
    %143 = arith.mulf %35, %142 : vector<1x256xf32>
    %144 = vector.broadcast %141 : f32 to vector<1x256xf32>
    %145 = arith.mulf %36, %144 : vector<1x256xf32>
    %146 = arith.addf %143, %145 : vector<1x256xf32>
    %147 = arith.addf %139, %146 : vector<1x256xf32>
    %c12 = arith.constant 12 : index
    %148 = memref.load %arg2[%c12] : memref<98xf32, #tpu.memory_space<smem>>
    %c61 = arith.constant 61 : index
    %149 = memref.load %arg2[%c61] : memref<98xf32, #tpu.memory_space<smem>>
    %150 = vector.broadcast %148 : f32 to vector<1x256xf32>
    %151 = arith.mulf %41, %150 : vector<1x256xf32>
    %152 = vector.broadcast %149 : f32 to vector<1x256xf32>
    %153 = arith.mulf %42, %152 : vector<1x256xf32>
    %154 = arith.addf %151, %153 : vector<1x256xf32>
    %155 = arith.addf %147, %154 : vector<1x256xf32>
    %c13 = arith.constant 13 : index
    %156 = memref.load %arg2[%c13] : memref<98xf32, #tpu.memory_space<smem>>
    %c62 = arith.constant 62 : index
    %157 = memref.load %arg2[%c62] : memref<98xf32, #tpu.memory_space<smem>>
    %158 = vector.broadcast %156 : f32 to vector<1x256xf32>
    %159 = arith.mulf %47, %158 : vector<1x256xf32>
    %160 = vector.broadcast %157 : f32 to vector<1x256xf32>
    %161 = arith.mulf %48, %160 : vector<1x256xf32>
    %162 = arith.addf %159, %161 : vector<1x256xf32>
    %163 = arith.addf %155, %162 : vector<1x256xf32>
    %c32_i32 = arith.constant 32 : i32
    %164 = tpu.dynamic_rotate %163 by %c32_i32 dim 1 : vector<1x256xf32>, i32 -> vector<1x256xf32>
    %c1_26 = arith.constant 1 : index
    %c0_27 = arith.constant 0 : index
    %165 = vector.load %arg3[%c1_26, %c0_27] : memref<7x256xf32, #tpu.memory_space<vmem>>, vector<1x256xf32>
    %166 = arith.mulf %164, %165 : vector<1x256xf32>
    %167 = arith.addf %108, %166 : vector<1x256xf32>
    %c14 = arith.constant 14 : index
    %168 = memref.load %arg2[%c14] : memref<98xf32, #tpu.memory_space<smem>>
    %c63 = arith.constant 63 : index
    %169 = memref.load %arg2[%c63] : memref<98xf32, #tpu.memory_space<smem>>
    %170 = vector.broadcast %168 : f32 to vector<1x256xf32>
    %171 = arith.mulf %15, %170 : vector<1x256xf32>
    %172 = vector.broadcast %169 : f32 to vector<1x256xf32>
    %173 = arith.mulf %16, %172 : vector<1x256xf32>
    %174 = arith.addf %171, %173 : vector<1x256xf32>
    %c15 = arith.constant 15 : index
    %175 = memref.load %arg2[%c15] : memref<98xf32, #tpu.memory_space<smem>>
    %c64 = arith.constant 64 : index
    %176 = memref.load %arg2[%c64] : memref<98xf32, #tpu.memory_space<smem>>
    %177 = vector.broadcast %175 : f32 to vector<1x256xf32>
    %178 = arith.mulf %21, %177 : vector<1x256xf32>
    %179 = vector.broadcast %176 : f32 to vector<1x256xf32>
    %180 = arith.mulf %22, %179 : vector<1x256xf32>
    %181 = arith.addf %178, %180 : vector<1x256xf32>
    %182 = arith.addf %174, %181 : vector<1x256xf32>
    %c16 = arith.constant 16 : index
    %183 = memref.load %arg2[%c16] : memref<98xf32, #tpu.memory_space<smem>>
    %c65 = arith.constant 65 : index
    %184 = memref.load %arg2[%c65] : memref<98xf32, #tpu.memory_space<smem>>
    %185 = vector.broadcast %183 : f32 to vector<1x256xf32>
    %186 = arith.mulf %27, %185 : vector<1x256xf32>
    %187 = vector.broadcast %184 : f32 to vector<1x256xf32>
    %188 = arith.mulf %28, %187 : vector<1x256xf32>
    %189 = arith.addf %186, %188 : vector<1x256xf32>
    %190 = arith.addf %182, %189 : vector<1x256xf32>
    %c17 = arith.constant 17 : index
    %191 = memref.load %arg2[%c17] : memref<98xf32, #tpu.memory_space<smem>>
    %c66 = arith.constant 66 : index
    %192 = memref.load %arg2[%c66] : memref<98xf32, #tpu.memory_space<smem>>
    %193 = vector.broadcast %191 : f32 to vector<1x256xf32>
    %194 = arith.mulf %29, %193 : vector<1x256xf32>
    %195 = vector.broadcast %192 : f32 to vector<1x256xf32>
    %196 = arith.mulf %30, %195 : vector<1x256xf32>
    %197 = arith.addf %194, %196 : vector<1x256xf32>
    %198 = arith.addf %190, %197 : vector<1x256xf32>
    %c18 = arith.constant 18 : index
    %199 = memref.load %arg2[%c18] : memref<98xf32, #tpu.memory_space<smem>>
    %c67 = arith.constant 67 : index
    %200 = memref.load %arg2[%c67] : memref<98xf32, #tpu.memory_space<smem>>
    %201 = vector.broadcast %199 : f32 to vector<1x256xf32>
    %202 = arith.mulf %35, %201 : vector<1x256xf32>
    %203 = vector.broadcast %200 : f32 to vector<1x256xf32>
    %204 = arith.mulf %36, %203 : vector<1x256xf32>
    %205 = arith.addf %202, %204 : vector<1x256xf32>
    %206 = arith.addf %198, %205 : vector<1x256xf32>
    %c19 = arith.constant 19 : index
    %207 = memref.load %arg2[%c19] : memref<98xf32, #tpu.memory_space<smem>>
    %c68 = arith.constant 68 : index
    %208 = memref.load %arg2[%c68] : memref<98xf32, #tpu.memory_space<smem>>
    %209 = vector.broadcast %207 : f32 to vector<1x256xf32>
    %210 = arith.mulf %41, %209 : vector<1x256xf32>
    %211 = vector.broadcast %208 : f32 to vector<1x256xf32>
    %212 = arith.mulf %42, %211 : vector<1x256xf32>
    %213 = arith.addf %210, %212 : vector<1x256xf32>
    %214 = arith.addf %206, %213 : vector<1x256xf32>
    %c20 = arith.constant 20 : index
    %215 = memref.load %arg2[%c20] : memref<98xf32, #tpu.memory_space<smem>>
    %c69 = arith.constant 69 : index
    %216 = memref.load %arg2[%c69] : memref<98xf32, #tpu.memory_space<smem>>
    %217 = vector.broadcast %215 : f32 to vector<1x256xf32>
    %218 = arith.mulf %47, %217 : vector<1x256xf32>
    %219 = vector.broadcast %216 : f32 to vector<1x256xf32>
    %220 = arith.mulf %48, %219 : vector<1x256xf32>
    %221 = arith.addf %218, %220 : vector<1x256xf32>
    %222 = arith.addf %214, %221 : vector<1x256xf32>
    %c16_i32 = arith.constant 16 : i32
    %223 = tpu.dynamic_rotate %222 by %c16_i32 dim 1 : vector<1x256xf32>, i32 -> vector<1x256xf32>
    %c2_28 = arith.constant 2 : index
    %c0_29 = arith.constant 0 : index
    %224 = vector.load %arg3[%c2_28, %c0_29] : memref<7x256xf32, #tpu.memory_space<vmem>>, vector<1x256xf32>
    %225 = arith.mulf %223, %224 : vector<1x256xf32>
    %226 = arith.addf %167, %225 : vector<1x256xf32>
    %c21 = arith.constant 21 : index
    %227 = memref.load %arg2[%c21] : memref<98xf32, #tpu.memory_space<smem>>
    %c70 = arith.constant 70 : index
    %228 = memref.load %arg2[%c70] : memref<98xf32, #tpu.memory_space<smem>>
    %229 = vector.broadcast %227 : f32 to vector<1x256xf32>
    %230 = arith.mulf %15, %229 : vector<1x256xf32>
    %231 = vector.broadcast %228 : f32 to vector<1x256xf32>
    %232 = arith.mulf %16, %231 : vector<1x256xf32>
    %233 = arith.addf %230, %232 : vector<1x256xf32>
    %c22 = arith.constant 22 : index
    %234 = memref.load %arg2[%c22] : memref<98xf32, #tpu.memory_space<smem>>
    %c71 = arith.constant 71 : index
    %235 = memref.load %arg2[%c71] : memref<98xf32, #tpu.memory_space<smem>>
    %236 = vector.broadcast %234 : f32 to vector<1x256xf32>
    %237 = arith.mulf %21, %236 : vector<1x256xf32>
    %238 = vector.broadcast %235 : f32 to vector<1x256xf32>
    %239 = arith.mulf %22, %238 : vector<1x256xf32>
    %240 = arith.addf %237, %239 : vector<1x256xf32>
    %241 = arith.addf %233, %240 : vector<1x256xf32>
    %c23 = arith.constant 23 : index
    %242 = memref.load %arg2[%c23] : memref<98xf32, #tpu.memory_space<smem>>
    %c72 = arith.constant 72 : index
    %243 = memref.load %arg2[%c72] : memref<98xf32, #tpu.memory_space<smem>>
    %244 = vector.broadcast %242 : f32 to vector<1x256xf32>
    %245 = arith.mulf %27, %244 : vector<1x256xf32>
    %246 = vector.broadcast %243 : f32 to vector<1x256xf32>
    %247 = arith.mulf %28, %246 : vector<1x256xf32>
    %248 = arith.addf %245, %247 : vector<1x256xf32>
    %249 = arith.addf %241, %248 : vector<1x256xf32>
    %c24 = arith.constant 24 : index
    %250 = memref.load %arg2[%c24] : memref<98xf32, #tpu.memory_space<smem>>
    %c73 = arith.constant 73 : index
    %251 = memref.load %arg2[%c73] : memref<98xf32, #tpu.memory_space<smem>>
    %252 = vector.broadcast %250 : f32 to vector<1x256xf32>
    %253 = arith.mulf %29, %252 : vector<1x256xf32>
    %254 = vector.broadcast %251 : f32 to vector<1x256xf32>
    %255 = arith.mulf %30, %254 : vector<1x256xf32>
    %256 = arith.addf %253, %255 : vector<1x256xf32>
    %257 = arith.addf %249, %256 : vector<1x256xf32>
    %c25 = arith.constant 25 : index
    %258 = memref.load %arg2[%c25] : memref<98xf32, #tpu.memory_space<smem>>
    %c74 = arith.constant 74 : index
    %259 = memref.load %arg2[%c74] : memref<98xf32, #tpu.memory_space<smem>>
    %260 = vector.broadcast %258 : f32 to vector<1x256xf32>
    %261 = arith.mulf %35, %260 : vector<1x256xf32>
    %262 = vector.broadcast %259 : f32 to vector<1x256xf32>
    %263 = arith.mulf %36, %262 : vector<1x256xf32>
    %264 = arith.addf %261, %263 : vector<1x256xf32>
    %265 = arith.addf %257, %264 : vector<1x256xf32>
    %c26 = arith.constant 26 : index
    %266 = memref.load %arg2[%c26] : memref<98xf32, #tpu.memory_space<smem>>
    %c75 = arith.constant 75 : index
    %267 = memref.load %arg2[%c75] : memref<98xf32, #tpu.memory_space<smem>>
    %268 = vector.broadcast %266 : f32 to vector<1x256xf32>
    %269 = arith.mulf %41, %268 : vector<1x256xf32>
    %270 = vector.broadcast %267 : f32 to vector<1x256xf32>
    %271 = arith.mulf %42, %270 : vector<1x256xf32>
    %272 = arith.addf %269, %271 : vector<1x256xf32>
    %273 = arith.addf %265, %272 : vector<1x256xf32>
    %c27 = arith.constant 27 : index
    %274 = memref.load %arg2[%c27] : memref<98xf32, #tpu.memory_space<smem>>
    %c76 = arith.constant 76 : index
    %275 = memref.load %arg2[%c76] : memref<98xf32, #tpu.memory_space<smem>>
    %276 = vector.broadcast %274 : f32 to vector<1x256xf32>
    %277 = arith.mulf %47, %276 : vector<1x256xf32>
    %278 = vector.broadcast %275 : f32 to vector<1x256xf32>
    %279 = arith.mulf %48, %278 : vector<1x256xf32>
    %280 = arith.addf %277, %279 : vector<1x256xf32>
    %281 = arith.addf %273, %280 : vector<1x256xf32>
    %c3_30 = arith.constant 3 : index
    %c0_31 = arith.constant 0 : index
    %282 = vector.load %arg3[%c3_30, %c0_31] : memref<7x256xf32, #tpu.memory_space<vmem>>, vector<1x256xf32>
    %283 = arith.mulf %281, %282 : vector<1x256xf32>
    %284 = arith.addf %226, %283 : vector<1x256xf32>
    %c28 = arith.constant 28 : index
    %285 = memref.load %arg2[%c28] : memref<98xf32, #tpu.memory_space<smem>>
    %c77 = arith.constant 77 : index
    %286 = memref.load %arg2[%c77] : memref<98xf32, #tpu.memory_space<smem>>
    %287 = vector.broadcast %285 : f32 to vector<1x256xf32>
    %288 = arith.mulf %15, %287 : vector<1x256xf32>
    %289 = vector.broadcast %286 : f32 to vector<1x256xf32>
    %290 = arith.mulf %16, %289 : vector<1x256xf32>
    %291 = arith.addf %288, %290 : vector<1x256xf32>
    %c29 = arith.constant 29 : index
    %292 = memref.load %arg2[%c29] : memref<98xf32, #tpu.memory_space<smem>>
    %c78 = arith.constant 78 : index
    %293 = memref.load %arg2[%c78] : memref<98xf32, #tpu.memory_space<smem>>
    %294 = vector.broadcast %292 : f32 to vector<1x256xf32>
    %295 = arith.mulf %21, %294 : vector<1x256xf32>
    %296 = vector.broadcast %293 : f32 to vector<1x256xf32>
    %297 = arith.mulf %22, %296 : vector<1x256xf32>
    %298 = arith.addf %295, %297 : vector<1x256xf32>
    %299 = arith.addf %291, %298 : vector<1x256xf32>
    %c30 = arith.constant 30 : index
    %300 = memref.load %arg2[%c30] : memref<98xf32, #tpu.memory_space<smem>>
    %c79 = arith.constant 79 : index
    %301 = memref.load %arg2[%c79] : memref<98xf32, #tpu.memory_space<smem>>
    %302 = vector.broadcast %300 : f32 to vector<1x256xf32>
    %303 = arith.mulf %27, %302 : vector<1x256xf32>
    %304 = vector.broadcast %301 : f32 to vector<1x256xf32>
    %305 = arith.mulf %28, %304 : vector<1x256xf32>
    %306 = arith.addf %303, %305 : vector<1x256xf32>
    %307 = arith.addf %299, %306 : vector<1x256xf32>
    %c31 = arith.constant 31 : index
    %308 = memref.load %arg2[%c31] : memref<98xf32, #tpu.memory_space<smem>>
    %c80 = arith.constant 80 : index
    %309 = memref.load %arg2[%c80] : memref<98xf32, #tpu.memory_space<smem>>
    %310 = vector.broadcast %308 : f32 to vector<1x256xf32>
    %311 = arith.mulf %29, %310 : vector<1x256xf32>
    %312 = vector.broadcast %309 : f32 to vector<1x256xf32>
    %313 = arith.mulf %30, %312 : vector<1x256xf32>
    %314 = arith.addf %311, %313 : vector<1x256xf32>
    %315 = arith.addf %307, %314 : vector<1x256xf32>
    %c32 = arith.constant 32 : index
    %316 = memref.load %arg2[%c32] : memref<98xf32, #tpu.memory_space<smem>>
    %c81 = arith.constant 81 : index
    %317 = memref.load %arg2[%c81] : memref<98xf32, #tpu.memory_space<smem>>
    %318 = vector.broadcast %316 : f32 to vector<1x256xf32>
    %319 = arith.mulf %35, %318 : vector<1x256xf32>
    %320 = vector.broadcast %317 : f32 to vector<1x256xf32>
    %321 = arith.mulf %36, %320 : vector<1x256xf32>
    %322 = arith.addf %319, %321 : vector<1x256xf32>
    %323 = arith.addf %315, %322 : vector<1x256xf32>
    %c33 = arith.constant 33 : index
    %324 = memref.load %arg2[%c33] : memref<98xf32, #tpu.memory_space<smem>>
    %c82 = arith.constant 82 : index
    %325 = memref.load %arg2[%c82] : memref<98xf32, #tpu.memory_space<smem>>
    %326 = vector.broadcast %324 : f32 to vector<1x256xf32>
    %327 = arith.mulf %41, %326 : vector<1x256xf32>
    %328 = vector.broadcast %325 : f32 to vector<1x256xf32>
    %329 = arith.mulf %42, %328 : vector<1x256xf32>
    %330 = arith.addf %327, %329 : vector<1x256xf32>
    %331 = arith.addf %323, %330 : vector<1x256xf32>
    %c34 = arith.constant 34 : index
    %332 = memref.load %arg2[%c34] : memref<98xf32, #tpu.memory_space<smem>>
    %c83 = arith.constant 83 : index
    %333 = memref.load %arg2[%c83] : memref<98xf32, #tpu.memory_space<smem>>
    %334 = vector.broadcast %332 : f32 to vector<1x256xf32>
    %335 = arith.mulf %47, %334 : vector<1x256xf32>
    %336 = vector.broadcast %333 : f32 to vector<1x256xf32>
    %337 = arith.mulf %48, %336 : vector<1x256xf32>
    %338 = arith.addf %335, %337 : vector<1x256xf32>
    %339 = arith.addf %331, %338 : vector<1x256xf32>
    %c240_i32 = arith.constant 240 : i32
    %340 = tpu.dynamic_rotate %339 by %c240_i32 dim 1 : vector<1x256xf32>, i32 -> vector<1x256xf32>
    %c4_32 = arith.constant 4 : index
    %c0_33 = arith.constant 0 : index
    %341 = vector.load %arg3[%c4_32, %c0_33] : memref<7x256xf32, #tpu.memory_space<vmem>>, vector<1x256xf32>
    %342 = arith.mulf %340, %341 : vector<1x256xf32>
    %343 = arith.addf %284, %342 : vector<1x256xf32>
    %c35 = arith.constant 35 : index
    %344 = memref.load %arg2[%c35] : memref<98xf32, #tpu.memory_space<smem>>
    %c84 = arith.constant 84 : index
    %345 = memref.load %arg2[%c84] : memref<98xf32, #tpu.memory_space<smem>>
    %346 = vector.broadcast %344 : f32 to vector<1x256xf32>
    %347 = arith.mulf %15, %346 : vector<1x256xf32>
    %348 = vector.broadcast %345 : f32 to vector<1x256xf32>
    %349 = arith.mulf %16, %348 : vector<1x256xf32>
    %350 = arith.addf %347, %349 : vector<1x256xf32>
    %c36 = arith.constant 36 : index
    %351 = memref.load %arg2[%c36] : memref<98xf32, #tpu.memory_space<smem>>
    %c85 = arith.constant 85 : index
    %352 = memref.load %arg2[%c85] : memref<98xf32, #tpu.memory_space<smem>>
    %353 = vector.broadcast %351 : f32 to vector<1x256xf32>
    %354 = arith.mulf %21, %353 : vector<1x256xf32>
    %355 = vector.broadcast %352 : f32 to vector<1x256xf32>
    %356 = arith.mulf %22, %355 : vector<1x256xf32>
    %357 = arith.addf %354, %356 : vector<1x256xf32>
    %358 = arith.addf %350, %357 : vector<1x256xf32>
    %c37 = arith.constant 37 : index
    %359 = memref.load %arg2[%c37] : memref<98xf32, #tpu.memory_space<smem>>
    %c86 = arith.constant 86 : index
    %360 = memref.load %arg2[%c86] : memref<98xf32, #tpu.memory_space<smem>>
    %361 = vector.broadcast %359 : f32 to vector<1x256xf32>
    %362 = arith.mulf %27, %361 : vector<1x256xf32>
    %363 = vector.broadcast %360 : f32 to vector<1x256xf32>
    %364 = arith.mulf %28, %363 : vector<1x256xf32>
    %365 = arith.addf %362, %364 : vector<1x256xf32>
    %366 = arith.addf %358, %365 : vector<1x256xf32>
    %c38 = arith.constant 38 : index
    %367 = memref.load %arg2[%c38] : memref<98xf32, #tpu.memory_space<smem>>
    %c87 = arith.constant 87 : index
    %368 = memref.load %arg2[%c87] : memref<98xf32, #tpu.memory_space<smem>>
    %369 = vector.broadcast %367 : f32 to vector<1x256xf32>
    %370 = arith.mulf %29, %369 : vector<1x256xf32>
    %371 = vector.broadcast %368 : f32 to vector<1x256xf32>
    %372 = arith.mulf %30, %371 : vector<1x256xf32>
    %373 = arith.addf %370, %372 : vector<1x256xf32>
    %374 = arith.addf %366, %373 : vector<1x256xf32>
    %c39 = arith.constant 39 : index
    %375 = memref.load %arg2[%c39] : memref<98xf32, #tpu.memory_space<smem>>
    %c88 = arith.constant 88 : index
    %376 = memref.load %arg2[%c88] : memref<98xf32, #tpu.memory_space<smem>>
    %377 = vector.broadcast %375 : f32 to vector<1x256xf32>
    %378 = arith.mulf %35, %377 : vector<1x256xf32>
    %379 = vector.broadcast %376 : f32 to vector<1x256xf32>
    %380 = arith.mulf %36, %379 : vector<1x256xf32>
    %381 = arith.addf %378, %380 : vector<1x256xf32>
    %382 = arith.addf %374, %381 : vector<1x256xf32>
    %c40 = arith.constant 40 : index
    %383 = memref.load %arg2[%c40] : memref<98xf32, #tpu.memory_space<smem>>
    %c89 = arith.constant 89 : index
    %384 = memref.load %arg2[%c89] : memref<98xf32, #tpu.memory_space<smem>>
    %385 = vector.broadcast %383 : f32 to vector<1x256xf32>
    %386 = arith.mulf %41, %385 : vector<1x256xf32>
    %387 = vector.broadcast %384 : f32 to vector<1x256xf32>
    %388 = arith.mulf %42, %387 : vector<1x256xf32>
    %389 = arith.addf %386, %388 : vector<1x256xf32>
    %390 = arith.addf %382, %389 : vector<1x256xf32>
    %c41 = arith.constant 41 : index
    %391 = memref.load %arg2[%c41] : memref<98xf32, #tpu.memory_space<smem>>
    %c90 = arith.constant 90 : index
    %392 = memref.load %arg2[%c90] : memref<98xf32, #tpu.memory_space<smem>>
    %393 = vector.broadcast %391 : f32 to vector<1x256xf32>
    %394 = arith.mulf %47, %393 : vector<1x256xf32>
    %395 = vector.broadcast %392 : f32 to vector<1x256xf32>
    %396 = arith.mulf %48, %395 : vector<1x256xf32>
    %397 = arith.addf %394, %396 : vector<1x256xf32>
    %398 = arith.addf %390, %397 : vector<1x256xf32>
    %c224_i32 = arith.constant 224 : i32
    %399 = tpu.dynamic_rotate %398 by %c224_i32 dim 1 : vector<1x256xf32>, i32 -> vector<1x256xf32>
    %c5_34 = arith.constant 5 : index
    %c0_35 = arith.constant 0 : index
    %400 = vector.load %arg3[%c5_34, %c0_35] : memref<7x256xf32, #tpu.memory_space<vmem>>, vector<1x256xf32>
    %401 = arith.mulf %399, %400 : vector<1x256xf32>
    %402 = arith.addf %343, %401 : vector<1x256xf32>
    %c42 = arith.constant 42 : index
    %403 = memref.load %arg2[%c42] : memref<98xf32, #tpu.memory_space<smem>>
    %c91 = arith.constant 91 : index
    %404 = memref.load %arg2[%c91] : memref<98xf32, #tpu.memory_space<smem>>
    %405 = vector.broadcast %403 : f32 to vector<1x256xf32>
    %406 = arith.mulf %15, %405 : vector<1x256xf32>
    %407 = vector.broadcast %404 : f32 to vector<1x256xf32>
    %408 = arith.mulf %16, %407 : vector<1x256xf32>
    %409 = arith.addf %406, %408 : vector<1x256xf32>
    %c43 = arith.constant 43 : index
    %410 = memref.load %arg2[%c43] : memref<98xf32, #tpu.memory_space<smem>>
    %c92 = arith.constant 92 : index
    %411 = memref.load %arg2[%c92] : memref<98xf32, #tpu.memory_space<smem>>
    %412 = vector.broadcast %410 : f32 to vector<1x256xf32>
    %413 = arith.mulf %21, %412 : vector<1x256xf32>
    %414 = vector.broadcast %411 : f32 to vector<1x256xf32>
    %415 = arith.mulf %22, %414 : vector<1x256xf32>
    %416 = arith.addf %413, %415 : vector<1x256xf32>
    %417 = arith.addf %409, %416 : vector<1x256xf32>
    %c44 = arith.constant 44 : index
    %418 = memref.load %arg2[%c44] : memref<98xf32, #tpu.memory_space<smem>>
    %c93 = arith.constant 93 : index
    %419 = memref.load %arg2[%c93] : memref<98xf32, #tpu.memory_space<smem>>
    %420 = vector.broadcast %418 : f32 to vector<1x256xf32>
    %421 = arith.mulf %27, %420 : vector<1x256xf32>
    %422 = vector.broadcast %419 : f32 to vector<1x256xf32>
    %423 = arith.mulf %28, %422 : vector<1x256xf32>
    %424 = arith.addf %421, %423 : vector<1x256xf32>
    %425 = arith.addf %417, %424 : vector<1x256xf32>
    %c45 = arith.constant 45 : index
    %426 = memref.load %arg2[%c45] : memref<98xf32, #tpu.memory_space<smem>>
    %c94 = arith.constant 94 : index
    %427 = memref.load %arg2[%c94] : memref<98xf32, #tpu.memory_space<smem>>
    %428 = vector.broadcast %426 : f32 to vector<1x256xf32>
    %429 = arith.mulf %29, %428 : vector<1x256xf32>
    %430 = vector.broadcast %427 : f32 to vector<1x256xf32>
    %431 = arith.mulf %30, %430 : vector<1x256xf32>
    %432 = arith.addf %429, %431 : vector<1x256xf32>
    %433 = arith.addf %425, %432 : vector<1x256xf32>
    %c46 = arith.constant 46 : index
    %434 = memref.load %arg2[%c46] : memref<98xf32, #tpu.memory_space<smem>>
    %c95 = arith.constant 95 : index
    %435 = memref.load %arg2[%c95] : memref<98xf32, #tpu.memory_space<smem>>
    %436 = vector.broadcast %434 : f32 to vector<1x256xf32>
    %437 = arith.mulf %35, %436 : vector<1x256xf32>
    %438 = vector.broadcast %435 : f32 to vector<1x256xf32>
    %439 = arith.mulf %36, %438 : vector<1x256xf32>
    %440 = arith.addf %437, %439 : vector<1x256xf32>
    %441 = arith.addf %433, %440 : vector<1x256xf32>
    %c47 = arith.constant 47 : index
    %442 = memref.load %arg2[%c47] : memref<98xf32, #tpu.memory_space<smem>>
    %c96 = arith.constant 96 : index
    %443 = memref.load %arg2[%c96] : memref<98xf32, #tpu.memory_space<smem>>
    %444 = vector.broadcast %442 : f32 to vector<1x256xf32>
    %445 = arith.mulf %41, %444 : vector<1x256xf32>
    %446 = vector.broadcast %443 : f32 to vector<1x256xf32>
    %447 = arith.mulf %42, %446 : vector<1x256xf32>
    %448 = arith.addf %445, %447 : vector<1x256xf32>
    %449 = arith.addf %441, %448 : vector<1x256xf32>
    %c48 = arith.constant 48 : index
    %450 = memref.load %arg2[%c48] : memref<98xf32, #tpu.memory_space<smem>>
    %c97 = arith.constant 97 : index
    %451 = memref.load %arg2[%c97] : memref<98xf32, #tpu.memory_space<smem>>
    %452 = vector.broadcast %450 : f32 to vector<1x256xf32>
    %453 = arith.mulf %47, %452 : vector<1x256xf32>
    %454 = vector.broadcast %451 : f32 to vector<1x256xf32>
    %455 = arith.mulf %48, %454 : vector<1x256xf32>
    %456 = arith.addf %453, %455 : vector<1x256xf32>
    %457 = arith.addf %449, %456 : vector<1x256xf32>
    %c208_i32 = arith.constant 208 : i32
    %458 = tpu.dynamic_rotate %457 by %c208_i32 dim 1 : vector<1x256xf32>, i32 -> vector<1x256xf32>
    %c6_36 = arith.constant 6 : index
    %c0_37 = arith.constant 0 : index
    %459 = vector.load %arg3[%c6_36, %c0_37] : memref<7x256xf32, #tpu.memory_space<vmem>>, vector<1x256xf32>
    %460 = arith.mulf %458, %459 : vector<1x256xf32>
    %461 = arith.addf %402, %460 : vector<1x256xf32>
    %462 = arith.negf %461 : vector<1x256xf32>
    %463 = math.exp %462 : vector<1x256xf32>
    %cst_38 = arith.constant 1.000000e+00 : f32
    %464 = vector.broadcast %cst_38 : f32 to vector<1x256xf32>
    %465 = arith.addf %464, %463 : vector<1x256xf32>
    %466 = arith.divf %464, %465 : vector<1x256xf32>
    %c0_39 = arith.constant 0 : index
    %c0_40 = arith.constant 0 : index
    %467 = vector.load %arg7[%c0_39, %c0_40] : memref<1x256xf32, #tpu.memory_space<vmem>>, vector<1x256xf32>
    tpu.vector_store %arg7[%c0_39, %c0_40], %466 {strides = array<i32>} : memref<1x256xf32, #tpu.memory_space<vmem>>, vector<1x256xf32>,
    %c0_41 = arith.constant 0 : index
    %c0_42 = arith.constant 0 : index
    %468 = vector.load %arg7[%c0_41, %c0_42] : memref<1x256xf32, #tpu.memory_space<vmem>>, vector<1x256xf32>
    %469 = vector.shape_cast %468 : vector<1x256xf32> to vector<1x256xf32>
    %470 = vector.broadcast %469 : vector<1x256xf32> to vector<4x256xf32>
    %c0_i32 = arith.constant 0 : i32
    %c4_i32 = arith.constant 4 : i32
    %471 = arith.muli %c0_i32, %c4_i32 : i32
    %472 = tpu.assume_multiple %471, 4 : i32
    %c0_43 = arith.constant 0 : index
    %473 = arith.index_cast %472 : i32 to index
    %c0_44 = arith.constant 0 : index
    %474 = vector.load %arg1[%c0_43, %473, %c0_44] : memref<1x4x256xf32, #tpu.memory_space<vmem>>, vector<1x4x256xf32>
    %475 = vector.shape_cast %474 : vector<1x4x256xf32> to vector<4x256xf32>
    %476 = arith.mulf %475, %470 : vector<4x256xf32>
    %c0_45 = arith.constant 0 : index
    %477 = arith.index_cast %472 : i32 to index
    %c0_46 = arith.constant 0 : index
    %478 = vector.load %arg5[%c0_45, %477, %c0_46] : memref<1x4x256xf32, #tpu.memory_space<vmem>>, vector<1x4x256xf32>
    %479 = vector.shape_cast %478 : vector<1x4x256xf32> to vector<4x256xf32>
    %480 = vector.shape_cast %476 : vector<4x256xf32> to vector<1x4x256xf32>
    tpu.vector_store %arg5[%c0_45, %477, %c0_46], %480 {strides = array<i32>} : memref<1x4x256xf32, #tpu.memory_space<vmem>>, vector<1x4x256xf32>,
    %c1_i32_47 = arith.constant 1 : i32
    return
  }
  func.func @transform_0(%arg0: i32) -> (i32, i32, i32) {
    %c0_i32 = arith.constant 0 : i32
    %c0_i32_0 = arith.constant 0 : i32
    %c0_i32_1 = arith.constant 0 : i32
    return %arg0, %c0_i32, %c0_i32_0 : i32, i32, i32
  }
  func.func @transform_1(%arg0: i32) -> i32 {
    %c0_i32 = arith.constant 0 : i32
    %c0_i32_0 = arith.constant 0 : i32
    return %c0_i32 : i32
  }
  func.func @transform_2(%arg0: i32) -> (i32, i32) {
    %c0_i32 = arith.constant 0 : i32
    %c0_i32_0 = arith.constant 0 : i32
    %c0_i32_1 = arith.constant 0 : i32
    return %c0_i32, %c0_i32_0 : i32, i32
  }
  func.func @transform_3(%arg0: i32) -> (i32, i32) {
    %c0_i32 = arith.constant 0 : i32
    %c0_i32_0 = arith.constant 0 : i32
    %c0_i32_1 = arith.constant 0 : i32
    return %c0_i32, %c0_i32_0 : i32, i32
  }
  func.func @transform_4(%arg0: i32) -> (i32, i32, i32) {
    %c0_i32 = arith.constant 0 : i32
    %c0_i32_0 = arith.constant 0 : i32
    %c0_i32_1 = arith.constant 0 : i32
    return %arg0, %c0_i32, %c0_i32_0 : i32, i32, i32
  }
}

</mosaic_0001>

<bundles_post_ra>
// kernel: tpu_custom_call.1
= control target key start
LH: loop header
LB: loop body
LE: loop exit
PB: predicated region body
PF: predicated region fallthrough
CT: control target
= control target key end

     0   :  { %s3121_s0 = inlined_call_operand.hbm [shape: f32[2,4,256], index: 0, kind: input, shape index: {}]   ;;  %s3122_s1 = inlined_call_operand.hbm [shape: f32[98], index: 1, kind: input, shape index: {}]   ;;  %s3123_s2 = inlined_call_operand.hbm [shape: f32[7,256], index: 2, kind: input, shape index: {}]   ;;  %s3124_s3 = inlined_call_operand.hbm [shape: f32[7,256], index: 3, kind: input, shape index: {}]   ;;  %s3125_s4 = inlined_call_operand.hbm [shape: f32[2,4,256], index: 4, kind: output, shape index: {}]  }
   0x1   :  { %3143 = sst [smem:[#allocation29_spill]] %s3121_s0 }
   0x2   :  { %3144 = sst [smem:[#allocation30_spill]] %s3122_s1 }
   0x3   :  { %3145 = sst [smem:[#allocation31_spill]] %s3123_s2 }
   0x4   :  { %3146 = sst [smem:[#allocation32_spill]] %s3124_s3 }
   0x5   :  { %3147 = sst [smem:[#allocation33_spill]] %s3125_s4 }
   0x6   :  { %9 = vsyncpa [#allocation5], 0 }
   0x7   :  { %11 = vsyncpa [#allocation5 + $0x1], 0 }
   0x8   :  { %12 = vsyncpa [#allocation7], 0 }
   0x9   :  { %13 = vsyncpa [#allocation10], 0 }
   0xa   :  { %14 = vsyncpa [#allocation6], 0 }
   0xb   :  { %16 = vsyncpa [#allocation6 + $0x1], 0  ;;  %s2058_s15 = smov 0   ;;  %s2060_s16 = smov 0  }
   0xc   :  { %s2062_s17 = smov 0   ;;  %s2064_s18 = smov 0  }
   0xd LB: > { %3148 = sst [smem:[#allocation17_spill]] %s2004_s15  ;;  %s2079_s19 = sadd.s32 4294967295, %s2016_s18   ;;  %s2016_s18 = sphi %s2064_s18, %s3216_s18   ;;  %s2012_s17 = sphi %s2062_s17, %s3219_s17   ;;  %s2008_s16 = sphi %s2060_s16, %s3218_s16   ;;  %s2004_s15 = sphi %s2058_s15, %s3217_s15  }
   0xe   : > { %3149 = sst [smem:[#allocation18_spill]] %s2008_s16  ;;  %s1612_s20 = sadd.s32 4294967294, %s2016_s18  }
   0xf   : > { %3150 = sst [smem:[#allocation19_spill]] %s2012_s17  ;;  %p42_p0 = scmp.ne.s32.totalorder %s2008_s16, %s2004_s15 }
  0x10   : > { %3151 = sst [smem:[#allocation20_spill]] %s2016_s18  ;;  %p43_p1 = scmp.eq.s32.totalorder %s2079_s19, 0 }
  0x11   : > { %3152 = sst [smem:[#allocation21_spill]] %s2079_s19  ;;  %p129_p2 = scmp.eq.s32.totalorder %s2079_s19, 1 }
  0x12   : > { %p135_p3 = scmp.eq.s32.totalorder %s1612_s20, 1  ;;  %p2088_p4 = por %p43_p1, %p42_p0 }
  0x13   : > { %p1613_p5 = scmp.ge.s32.totalorder %s2016_s18, 1  ;;  %p142_p7 = scmp.lt.s32.totalorder %s2016_s18, 3 }
  0x14   : > { %p2093_p6 = por %p135_p3, %p42_p0  ;;  %s3156_s2 = sld [smem:[#allocation31_spill]] }
  0x15   : > { %p2101_p8 = pnand %p1613_p5, %p142_p7  ;;  %s2018_s27 = smov [#allocation9]  }
  0x16   : > { %s3154_s22 = scalar_select %p2093_p6, 1, 0 }
  0x17   : > { %p1756_p10 = pneg %p2101_p8  ;;  %s166_s28 = sshll.u32 %s2018_s27, 4  ;;  %s167_s28 = int_to_ptr.vmem [resolvable:$true] %s166_s28 }
  0x18   : > { %3155 = sst [smem:[#allocation22_spill]] %s3154_s22  ;;  %s2019_s9 = smov [#allocation8]  }
  0x19   : > { %s3158_s1 = sld [smem:[#allocation30_spill]]  ;;  %p1757_p11 = pnand %p1756_p10, %p43_p1 }
  0x1a   : > { %s164_s25 = sshll.u32 %s3156_s2, 4  ;;  %s3159_s3 = sld [smem:[#allocation32_spill]]  ;;  %s165_s25 = int_to_ptr.hbm [resolvable:$true] %s164_s25 }
  0x1b   : > { %1762 = dma.hbm_to_vmem [thread:$0]  (!%p1757_p11), %s165_s25, 256, %s167_s28, [#allocation10]  }
  0x1c   : > { %s2020_s10 = smov [#allocation11]   ;;  %s2117_s12 = sadd.s32 1, %s2016_s18  }
  0x1d   : > { %s178_s11 = sshll.u32 %s2020_s10, 4  ;;  %3160 = sst [smem:[#allocation23_spill]] %s2117_s12  ;;  %s179_s11 = int_to_ptr.vmem [resolvable:$true] %s178_s11 }
  0x1e   : > { %s26_s13 = ssub.s32 %s2016_s18, %s2117_s12  ;;  %s29_s14 = sadd.s32 1, %s2012_s17 }
  0x1f   : > { %s154_s5 = sshll.u32 %s3158_s1, 4  ;;  %p27_p12 = scmp.eq.s32.totalorder %s26_s13, 0  ;;  %s155_s5 = int_to_ptr.hbm [resolvable:$true] %s154_s5 }
  0x20   : > { %s176_s8 = sshll.u32 %s3159_s3, 4  ;;  %p36_p13 = scmp.ne.s32.totalorder %s2012_s17, %s2008_s16  ;;  %s177_s8 = int_to_ptr.hbm [resolvable:$true] %s176_s8 }
  0x21   : > { %1759 = dma.hbm_to_smem (!%p1757_p11), %s155_s5, 16, %s2019_s9, [#allocation7]  }
  0x22   : > { %1765 = dma.hbm_to_vmem [thread:$0]  (!%p1757_p11), %s177_s8, 256, %s179_s11, [#allocation10]  }
  0x23   : > { %p37_p0 = scmp.eq.s32.totalorder %s2016_s18, 0  ;;  %p2130_p3 = por %p129_p2, %p36_p13 }
  0x24   : > { %s2126_s20 = scalar_select %p27_p12, %s2012_s17, %s29_s14  }
  0x25   : > { %s3162_s23 = scalar_select %p2130_p3, 1, 0 }
  0x26   : > { %3161 = sst [smem:[#allocation24_spill]] %s2126_s20  ;;  %p1777_p5 = scmp.lt.s32.totalorder %s2016_s18, 2 }
  0x27   : > { %3163 = sst [smem:[#allocation25_spill]] %s3162_s23  ;;  %s189_s24 = sand.u32 1, %s2012_s17  }
  0x28   : > { %s1738_s25 = sshll.u32 %s2016_s18, 3  ;;  %p38_p7 = por %p37_p0, %p36_p13 }
  0x29   : > { %s1618_s27 = sshll.u32 %s189_s24, 3  ;;  %s3164_s0 = sld [smem:[#allocation29_spill]] }
  0x2a   : > { %s193_s6 = scalar_lea.vmem [#allocation4], %s1618_s27  ;;  %p2140_p10 = pnand %p1777_p5, %p38_p7 }
  0x2b   : > { %s202_s7 = sshll.u32 %s193_s6, 4  ;;  %s190_s9 = scalar_lea.sflag [#allocation5], %s189_s24  ;;  %s203_s7 = int_to_ptr.vmem [resolvable:$true] %s202_s7 }
  0x2c   : > { %p1916_p11 = pneg %p2140_p10 }
  0x2f   : > { %s198_s30 = scalar_lea.hbm %s3164_s0, %s1738_s25  ;;  %s1919_s25 = scalar_lea.hbm %s3164_s0, 16 }
  0x30   : > { %s200_s5 = sshll.u32 %s198_s30, 4  ;;  %s201_s5 = int_to_ptr.hbm [resolvable:$true] %s200_s5 }
  0x31   : > { %s1912_s10 = sshra.s32 %s201_s5, 4  ;;  %s1913_s10 = int_to_ptr.hbm [resolvable:$true] %s1912_s10 }
  0x32   : > { %s1914_s11 = scalar_lea.hbm %s1913_s10, 8  ;;  %p1920_p0 = scmp.lt.s32.totalorder %s1913_s10, %s3164_s0 }
  0x33   : > { %p1915_p2 = scmp.ne.s32.totalorder %s1913_s10, %s1914_s11  ;;  %p1921_p5 = scmp.lt.s32.totalorder %s1919_s25, %s1914_s11 }
  0x35   : > { %p1917_p12 = pnand %p1916_p11, %p1915_p2  ;;  %p1922_p7 = por %p1921_p5, %p1920_p0 }
  0x37   : > { %p1918_p13 = pneg %p1917_p12 }
  0x39   : > { %p1923_p9 = pnand %p1922_p7, %p1918_p13 }
  0x3b   : > { %1926 = shalt.err (!%p1923_p9)
}
  0x3c   : > { %1769 = dma.hbm_to_vmem [thread:$0]  (!%p2140_p10), %s201_s5, 128, %s203_s7, %s190_s9  }
  0x3d   : > { %211 = sbr.rel (%p2101_p8) target bundleno = 546 (0x222), region = 36 }
  0x42   : > { %s2157_s24 = sand.u32 1, %s2008_s16  }
  0x43   : > { %3166 = sst [smem:[#allocation26_spill]] %s2157_s24  ;;  %s3126_s29 = sshll.u32 %s2157_s24, 3 }
  0x44   : > { %s214_s30 = scalar_lea.sflag [#allocation5], %s2157_s24  ;;  %s2163_s6 = scalar_lea.vmem [#allocation4], %s3126_s29 }
  0x45   : > { %3167 = sst [smem:[#allocation27_spill]] %s2163_s6 }
  0x46   : > { %1987 = dma.done.wait (%p2088_p4), %s214_s30, 128  }
  0x47   : > { %1989 = vsyncadd (%p2088_p4), %s214_s30, 4294967168 }
  0x48   : > { %1991 = dma.done.wait (%p43_p1), [#allocation7], 16  }
  0x49   : > { %1993 = vsyncadd (%p43_p1), [#allocation7], 4294967280 }
  0x4a   : > { %1995 = dma.done.wait (%p43_p1), [#allocation10], 512  }
  0x4b   : > { %1997 = vsyncadd (%p43_p1), [#allocation10], 4294966784 }
  0x4c   : > { %238 = sfence }
  0x4d   : > { %v259_v0 = vld [vmem:[%s2163_s6] sm:$0xff]  ;;  %vm266_vm0 = vcmask 1043456   ;;  %v308_v21 = vlaneseq  ;;  %vm305_vm1 = vcmask 1040384   ;;  %s2021_s21 = smov 3   ;;  %s2022_s26 = smov 2  }
  0x4e   : > { %261 = vst [vmem:[#allocation1] ss:$2 sm:$0xff] %v259_v0  ;;  %s2023_s5 = smov 1   ;;  %s2024_s7 = smov 127  }
  0x4f   : > { %vm2183_vm2 = vcmp.lt.s32.totalorder %v308_v21, 256  ;;  %s2025_s8 = smov 126   ;;  %s2026_s9 = smov 125   ;;  %v2243_v54 = vld [vmem:[#allocation11] ss:$8 sm:$0x3] }
  0x50   : > { %s2201_s10 = sld [smem:[#allocation8 + $0x31]]  ;;  %v2247_v55 = vld [vmem:[#allocation11 + $0x2] ss:$8 sm:$0x3]  ;;  %v2256_v57 = vand.u32 127, %v308_v21  ;;  %v338_v58 = vperm.slane %v2243_v54, 0 }
  0x51   : > { %s2203_s11 = sld [smem:[#allocation8 + $0x38]]  ;;  %v2251_v56 = vld [vmem:[#allocation11 + $0x1] ss:$8 sm:$0x3]  ;;  %v339_v59 = vperm.slane %v2243_v54, 1  ;;  %v380_v60 = vperm.slane %v2247_v55, 0 }
  0x52   : > { %s2205_s13 = sld [smem:[#allocation8]]  ;;  %v381_v61 = vperm.slane %v2247_v55, 1  ;;  %vm374_vm3 = vcmp.lt.s32.totalorder %v2256_v57, 1  ;;  %vm333_vm4 = vcmp.lt.s32.totalorder %v2256_v57, 3  ;;  %vm353_vm5 = vcmp.lt.s32.totalorder %v2256_v57, 2 }
  0x53   : > { %s2207_s14 = sld [smem:[#allocation8 + $0x33]]  ;;  %vm395_vm6 = vcmp.lt.s32.totalorder %v2256_v57, 127  ;;  %vm416_vm7 = vcmp.lt.s32.totalorder %v2256_v57, 126  ;;  %vm437_vm8 = vcmp.lt.s32.totalorder %v2256_v57, 125  ;;  %vm718_vm9 = vcmp.lt.s32.totalorder %v2256_v57, 32 }
  0x54   : > { %s2209_s25 = sld [smem:[#allocation8 + $0x1]]  ;;  %vm577_vm10 = vcmp.lt.s32.totalorder %v2256_v57, 48  ;;  %vm860_vm11 = vcmp.lt.s32.totalorder %v2256_v57, 16  ;;  %vm1137_vm12 = vcmp.lt.s32.totalorder %v2256_v57, 112  ;;  %vm1421_vm13 = vcmp.lt.s32.totalorder %v2256_v57, 80 }
  0x55   : > { %v262_v1 = vld.sshfl [vmem:[#allocation1] sm:$0xff pattern:$0x75316420]  ;;  %v263_v2 = vld.sshfl [vmem:[#allocation1 + $0x8] sm:$0xff pattern:$0x75316420] }
  0x56   : > { %v267_v3 = vsel %vm266_vm0, %v262_v1, 0.0  ;;  %v274_v4 = vsel %vm266_vm0, %v263_v2, 0.0  ;;  %281 = vst [vmem:[#allocation1] ss:$2 sm:$0xff] %v259_v0  ;;  %s2211_s27 = sld [smem:[#allocation8 + $0x32]]  ;;  %v359_v0 = vperm.slane %v2251_v56, 0 }
  0x57   : > { %v268_v5 = vrot.slane %v267_v3, 4  ;;  %v275_v6 = vrot.slane %v274_v4, 4  ;;  %s2213_s28 = sld [smem:[#allocation8 + $0x2]]  ;;  %v360_v1 = vperm.slane %v2251_v56, 1  ;;  %vm1279_vm14 = vcmp.lt.s32.totalorder %v2256_v57, 96 }
  0x58   : > { %s2215_s30 = sld [smem:[#allocation8 + $0x3]] }
  0x59   : > { %v269_v7 = vadd.f32 %v268_v5, %v267_v3  ;;  %v276_v8 = vadd.f32 %v275_v6, %v274_v4  ;;  %s2229_s29 = sld [smem:[#allocation8 + $0x9]]  ;;  %v454_v4 = vstv %s2201_s10  ;;  %v595_v6 = vstv %s2203_s11 }
  0x5a   : > { %s2231_s0 = sld [smem:[#allocation8 + $0x3a]]  ;;  %v467_v21 = vstv %s2209_s25  ;;  %s2028_s25 = smov 32  }
  0x5b   : > { %v270_v9 = vrot.slane %v269_v7, 2  ;;  %v277_v10 = vrot.slane %v276_v8, 2  ;;  %s2233_s1 = sld [smem:[#allocation8 + $0xa]] }
  0x5c   : > { %s1648_s2 = sld [smem:[#allocation8 + $0x3b]] }
  0x5d   : > { %v271_v11 = vadd.f32 %v270_v9, %v269_v7  ;;  %v278_v12 = vadd.f32 %v277_v10, %v276_v8  ;;  %v282_v13 = vld.sshfl [vmem:[#allocation1] sm:$0xff pattern:$0x75316420]  ;;  %v283_v14 = vld.sshfl [vmem:[#allocation1 + $0x8] sm:$0xff pattern:$0x75316420]  ;;  %v451_v9 = vstv %s2205_s13  ;;  %v488_v10 = vstv %s2207_s14 }
  0x5e   : > { %v286_v15 = vsel %vm266_vm0, %v282_v13, -inf  ;;  %v293_v16 = vsel %vm266_vm0, %v283_v14, -inf  ;;  %s2235_s3 = sld [smem:[#allocation8 + $0x5]]  ;;  %v503_v5 = vstv %s2215_s30  ;;  %s2027_s13 = smov 48  }
  0x5f   : > { %v272_v17 = vrot.slane %v271_v11, 1  ;;  %v279_v18 = vrot.slane %v278_v12, 1  ;;  %v287_v19 = vrot.slane %v286_v15, 4  ;;  %v294_v20 = vrot.slane %v293_v16, 4  ;;  %s2237_s20 = sld [smem:[#allocation8 + $0x36]] }
  0x60   : > { %s2239_s17 = sld [smem:[#allocation8 + $0xe]] }
  0x61   : > { %v273_v22 = vadd.f32 %v272_v17, %v271_v11  ;;  %v280_v23 = vadd.f32 %v279_v18, %v278_v12  ;;  %v288_v24 = vmax.f32 %v286_v15, %v287_v19  ;;  %v295_v25 = vmax.f32 %v293_v16, %v294_v20  ;;  %s2241_s16 = sld [smem:[#allocation8 + $0x3f]] }
  0x62   : > { %s2245_s12 = sld [smem:[#allocation8 + $0x42]]  ;;  %v646_v63 = vstv %s1648_s2  ;;  %v644_v7 = vstv %s2233_s1  ;;  %v629_v17 = vstv %s2231_s0 }
  0x63   : > { %v289_v26 = vrot.slane %v288_v24, 2  ;;  %v296_v27 = vrot.slane %v295_v25, 2  ;;  %v300_v28 = vmul.f32 0.25, %v273_v22  ;;  %v301_v29 = vmul.f32 0.25, %v280_v23  ;;  %s2249_s18 = sld [smem:[#allocation8 + $0x11]] }
  0x64   : > { %s2253_s22 = sld [smem:[#allocation8 + $0xf]]  ;;  %v470_v22 = vstv %s2211_s27  ;;  %v485_v23 = vstv %s2213_s28 }
  0x65   : > { %v290_v30 = vmax.f32 %v288_v24, %v289_v26  ;;  %v297_v31 = vmax.f32 %v295_v25, %v296_v27  ;;  %v304_v32 = vrot.slane %v301_v29, 7  ;;  %s2260_s15 = sld [smem:[#allocation8 + $0x40]]  ;;  %v2302_v25 = vld [vmem:[#allocation11 + $0x4] ss:$8 sm:$0x3] }
  0x66   : > { %s2265_s23 = sld [smem:[#allocation8 + $0x41]] }
  0x67   : > { %v291_v34 = vrot.slane %v290_v30, 1  ;;  %v298_v35 = vrot.slane %v297_v31, 1  ;;  %v306_v36 = vsel %vm305_vm1, %v300_v28, %v304_v32  ;;  %s2271_s4 = sld [smem:[#allocation8 + $0x10]]  ;;  %v737_v18 = vstv %s2241_s16 }
  0x68   : > { %312 = vst.msk [vmem:[#allocation2] ss:$2 sm:$0x3] %vm2183_vm2, %v306_v36  ;;  %s2278_s2 = sld [smem:[#allocation8 + $0x3c]]  ;;  %v788_v16 = vstv %s2245_s12  ;;  %v734_v32 = vstv %s2239_s17 }
  0x69   : > { %v292_v37 = vmax.f32 %v290_v30, %v291_v34  ;;  %v299_v38 = vmax.f32 %v297_v31, %v298_v35  ;;  %s2288_s1 = sld [smem:[#allocation8 + $0x43]]  ;;  %v786_v19 = vstv %s2249_s18  ;;  %v626_v31 = vstv %s2229_s29 }
  0x6a   : > { %s2294_s30 = sld [smem:[#allocation8 + $0x12]]  ;;  %v750_v35 = vstv %s2253_s22 }
  0x6b   : > { %v315_v39 = vrot.slane %v299_v38, 7  ;;  %s2300_s12 = sld [smem:[#allocation8 + $0xc]]  ;;  %v753_v36 = vstv %s2260_s15 }
  0x6c   : > { %s2308_s18 = sld [smem:[#allocation8 + $0x3d]]  ;;  %v771_v34 = vstv %s2265_s23 }
  0x6d   : > { %v316_v40 = vsel %vm305_vm1, %v292_v37, %v315_v39  ;;  %v768_v37 = vstv %s2271_s4  ;;  %s2321_s28 = sld [smem:[#allocation8 + $0x13]]  ;;  %v401_v39 = vperm.slane %v2302_v25, 0 }
  0x6e   : > { %319 = vst.msk [vmem:[#allocation2 + $0x1] ss:$2 sm:$0x3] %vm2183_vm2, %v316_v40  ;;  %v402_v40 = vperm.slane %v2302_v25, 1  ;;  %s2333_s4 = sld [smem:[#allocation8 + $0x44]] }
  0x6f   : > { %s2345_s23 = sld [smem:[#allocation8 + $0x6]] }
  0x70   : > { %s2359_s24 = sld [smem:[#allocation8 + $0x37]] }
  0x71   : > { %s2365_s6 = sld [smem:[#allocation8 + $0xd]] }
  0x72   : > { %s2377_s19 = sld [smem:[#allocation8 + $0x3e]] }
  0x73   : > { %3170 = sst [smem:[#allocation28_spill]] %s2321_s28 }
  0x74   : > { %s2390_s14 = sld [smem:[#allocation8 + $0x14]] }
  0x75   : > { %v2193_v41 = vld [vmem:[#allocation2] sm:$0xf]  ;;  %s2400_s28 = sld [smem:[#allocation8 + $0x45]] }
  0x76   : > { %322 = vst [vmem:[#allocation1] ss:$4 sm:$0xff] %v2193_v41  ;;  %v647_v3 = vmul.f32 %v646_v63, %v2193_v41  ;;  %v504_v11 = vmul.f32 %v503_v5, %v2193_v41  ;;  %v645_v14 = vmul.f32 %v644_v7, %v2193_v41  ;;  %v789_v20 = vmul.f32 %v788_v16, %v2193_v41  ;;  %s3176_s0 = sld [smem:[#allocation28_spill]] }
  0x77   : > { %v787_v28 = vmul.f32 %v786_v19, %v2193_v41  ;;  %s2639_s15 = sld [smem:[#allocation8 + $0x4d]] }
  0x78   : > { %v1649_v15 = vrot.slane %v647_v3, 9  ;;  %v1664_v29 = vrot.slane %v789_v20, 9  ;;  %v2343_v3 = vld [vmem:[#allocation11 + $0x6] ss:$8 sm:$0x3]  ;;  %s2653_s16 = sld [smem:[#allocation8 + $0x1d]] }
  0x79   : > { %s2664_s17 = sld [smem:[#allocation8 + $0x4e]] }
  0x7a   : > { %v2306_v27 = vadd.f32 %v1649_v15, %v645_v14  ;;  %v2319_v38 = vadd.f32 %v1664_v29, %v787_v28  ;;  %s2669_s22 = sld [smem:[#allocation8 + $0x1e]] }
  0x7b   : > { %s2682_s29 = sld [smem:[#allocation8 + $0x50]] }
  0x7c   : > { %s2685_s10 = sld [smem:[#allocation8 + $0x20]] }
  0x7d   : > { %v323_v42 = vld.sshfl [vmem:[#allocation1] sm:$0xff pattern:$0x73625140]  ;;  %v324_v43 = vld.sshfl [vmem:[#allocation1 + $0x8] sm:$0xff pattern:$0x73625140] }
  0x7e   : > { %327 = vrot.lane.b32.xlu0 %v323_v42, %s2021_s21  ;;  %344 = vst [vmem:[#allocation1] ss:$4 sm:$0xff] %v2193_v41  ;;  %v2325_v42 = vld [vmem:[#allocation11 + $0x5] ss:$8 sm:$0x3]  ;;  %s2688_s11 = sld [smem:[#allocation8 + $0x51]] }
  0x7f   : > { %s2696_s27 = sld [smem:[#allocation8 + $0x23]] }
  0x85   : > { %v345_v44 = vld.sshfl [vmem:[#allocation1] sm:$0xff pattern:$0x73625140]  ;;  %v346_v45 = vld.sshfl [vmem:[#allocation1 + $0x8] sm:$0xff pattern:$0x73625140] }
  0x86   : > { %349 = vrot.lane.b32.xlu1 %v345_v44, %s2022_s26  ;;  %329 = vrot.lane.b32.xlu0 %v324_v43, %s2021_s21  ;;  %365 = vst [vmem:[#allocation1] ss:$4 sm:$0xff] %v2193_v41  ;;  %s2217_s21 = sld [smem:[#allocation8 + $0x34]]  ;;  %v665_v44 = vstv %s2278_s2  ;;  %s2029_s2 = smov 16  }
  0x8c   : > { %v505_v62 = vstv %s2217_s21  ;;  %s2284_s21 = sld [smem:[#allocation8 + $0xb]] }
  0x8d   : > { %v366_v46 = vld.sshfl [vmem:[#allocation1] sm:$0xff pattern:$0x73625140]  ;;  %v367_v47 = vld.sshfl [vmem:[#allocation1 + $0x8] sm:$0xff pattern:$0x73625140]  ;;  %v506_v2 = vmul.f32 %v505_v62, %v2193_v41 }
  0x8e   : > { %351 = vrot.lane.b32.xlu1 %v346_v45, %s2022_s26  ;;  %386 = vst [vmem:[#allocation1] ss:$4 sm:$0xff] %v2193_v41  ;;  %370 = vrot.lane.b32.xlu2 %v366_v46, %s2023_s5  ;;  %s2219_s26 = sld [smem:[#allocation8 + $0x7]] }
  0x8f   : > { %v1634_v13 = vrot.slane %v506_v2, 9 }
  0x91   : > { %v2304_v26 = vadd.f32 %v1634_v13, %v504_v11 }
  0x93   : > { %v514_v46 = vperm.slane %v2304_v26, 2 }
  0x94   : > { %v592_v12 = vstv %s2219_s26  ;;  %s2705_s26 = sld [smem:[#allocation8 + $0x54]] }
  0x95   : > { %v388_v48 = vld.sshfl [vmem:[#allocation1 + $0x8] sm:$0xff pattern:$0x73625140]  ;;  %v387_v49 = vld.sshfl [vmem:[#allocation1] sm:$0xff pattern:$0x73625140] }
  0x96   : > { %393 = vrot.lane.b32.xlu1 %v388_v48, %s2024_s7  ;;  %391 = vrot.lane.b32.xlu0 %v387_v49, %s2024_s7  ;;  %407 = vst [vmem:[#allocation1] ss:$4 sm:$0xff] %v2193_v41  ;;  %s2223_s7 = sld [smem:[#allocation8 + $0x35]]  ;;  %v654_v48 = vperm.slane %v2306_v27, 0  ;;  %v662_v49 = vstv %s2284_s21 }
  0x97   : > { %372 = vrot.lane.b32.xlu2 %v367_v47, %s2023_s5  ;;  %s2221_s5 = sld [smem:[#allocation8 + $0x8]] }
  0x98   : > { %s2753_s21 = sld [smem:[#allocation8 + $0x25]] }
  0x9c   : > { %v524_v43 = vstv %s2223_s7  ;;  %s2723_s7 = sld [smem:[#allocation8 + $0x52]] }
  0x9d   : > { %v409_v50 = vld.sshfl [vmem:[#allocation1 + $0x8] sm:$0xff pattern:$0x73625140]  ;;  %v408_v51 = vld.sshfl [vmem:[#allocation1] sm:$0xff pattern:$0x73625140]  ;;  %v608_v24 = vstv %s2221_s5 }
  0x9e   : > { %414 = vrot.lane.b32.xlu0 %v409_v50, %s2025_s8  ;;  %428 = vst [vmem:[#allocation1] ss:$4 sm:$0xff] %v2193_v41  ;;  %s2717_s5 = sld [smem:[#allocation8 + $0x21]] }
  0x9f   : > { %412 = vrot.lane.b32.xlu2 %v408_v51, %s2025_s8  ;;  %s2225_s8 = sld [smem:[#allocation8 + $0x4]] }
  0xa5   : > { %v429_v52 = vld.sshfl [vmem:[#allocation1] sm:$0xff pattern:$0x73625140]  ;;  %v430_v53 = vld.sshfl [vmem:[#allocation1 + $0x8] sm:$0xff pattern:$0x73625140]  ;;  %v521_v47 = vstv %s2225_s8 }
  0xa6   : > { %433 = vrot.lane.b32.xlu1 %v429_v52, %s2026_s9  ;;  %s2740_s8 = sld [smem:[#allocation8 + $0x24]] }
  0xa7   : > { %435 = vrot.lane.b32.xlu2 %v430_v53, %s2026_s9  ;;  %s2227_s9 = sld [smem:[#allocation8 + $0x39]]  ;;  %v513_v53 = vperm.slane %v2304_v26, 0 }
  0xad   : > { %v611_v30 = vstv %s2227_s9  ;;  %s2745_s9 = sld [smem:[#allocation8 + $0x55]] }
  0xe8   : > { %v371_v8 = vpop.permute.xlu2 %370 }
  0xf0   : > { %v328_v45 = vpop.permute.xlu0 %327 }
  0xf1   : > { %v373_v50 = vpop.permute.xlu2 %372 }
  0xf2   : > { %v375_v63 = vsel %vm374_vm3, %v371_v8, %v373_v50  ;;  %v376_v2 = vsel %vm374_vm3, %v373_v50, %v371_v8 }
  0xf3   : > { %v2351_v11 = vmul.f32 %v380_v60, %v376_v2  ;;  %v2355_v13 = vmul.f32 %v381_v61, %v375_v63 }
  0xf5   : > { %v487_v60 = vmul.f32 %v485_v23, %v2355_v13  ;;  %v490_v55 = vmul.f32 %v488_v10, %v2355_v13  ;;  %v627_v61 = vmul.f32 %v626_v31, %v2351_v11  ;;  %v630_v28 = vmul.f32 %v629_v17, %v2351_v11 }
  0xf6   : > { %v486_v29 = vmul.f32 %v485_v23, %v2351_v11  ;;  %v489_v50 = vmul.f32 %v488_v10, %v2351_v11  ;;  %v769_v63 = vmul.f32 %v768_v37, %v2351_v11  ;;  %v772_v2 = vmul.f32 %v771_v34, %v2351_v11 }
  0xf7   : > { %v494_v14 = vrot.slane %v490_v55, 1  ;;  %v634_v8 = vrot.slane %v630_v28, 1  ;;  %v770_v20 = vmul.f32 %v768_v37, %v2355_v13  ;;  %v773_v19 = vmul.f32 %v771_v34, %v2355_v13 }
  0xf8   : > { %v350_v16 = vpop.permute.xlu1 %349  ;;  %v330_v15 = vpop.permute.xlu0 %329  ;;  %v493_v52 = vrot.slane %v489_v50, 1  ;;  %v776_v51 = vrot.slane %v772_v2, 1 }
  0xf9   : > { %v334_v10 = vsel %vm333_vm4, %v328_v45, %v330_v15  ;;  %v335_v37 = vsel %vm333_vm4, %v330_v15, %v328_v45  ;;  %v2396_v34 = vadd.f32 %v494_v14, %v487_v60  ;;  %v2398_v55 = vadd.f32 %v634_v8, %v627_v61 }
  0xfa   : > { %v2404_v28 = vmul.f32 %v338_v58, %v335_v37  ;;  %v2408_v50 = vmul.f32 %v339_v59, %v334_v10  ;;  %v2411_v45 = vadd.f32 %v493_v52, %v486_v29  ;;  %v2414_v8 = vadd.f32 %v776_v51, %v769_v63 }
  0xfb   : > { %v777_v15 = vrot.slane %v773_v19, 1 }
  0xfc   : > { %v453_v58 = vmul.f32 %v451_v9, %v2408_v50  ;;  %v456_v54 = vmul.f32 %v454_v4, %v2408_v50  ;;  %v593_v59 = vmul.f32 %v592_v12, %v2404_v28  ;;  %v596_v52 = vmul.f32 %v595_v6, %v2404_v28 }
  0xfd   : > { %v452_v19 = vmul.f32 %v451_v9, %v2404_v28  ;;  %v455_v29 = vmul.f32 %v454_v4, %v2404_v28  ;;  %v735_v37 = vmul.f32 %v734_v32, %v2404_v28  ;;  %v738_v14 = vmul.f32 %v737_v18, %v2404_v28 }
  0xfe   : > { %v460_v63 = vrot.slane %v456_v54, 1  ;;  %v600_v10 = vrot.slane %v596_v52, 1  ;;  %v736_v51 = vmul.f32 %v734_v32, %v2408_v50  ;;  %v739_v9 = vmul.f32 %v737_v18, %v2408_v50 }
  0xff   : > { %v459_v61 = vrot.slane %v455_v29, 1  ;;  %v2450_v4 = vadd.f32 %v777_v15, %v770_v20  ;;  %v742_v60 = vrot.slane %v738_v14, 1 }
 0x100   : > { %v352_v54 = vpop.permute.xlu1 %351  ;;  %v464_v52 = vadd.f32 %v460_v63, %v453_v58  ;;  %v604_v2 = vadd.f32 %v600_v10, %v593_v59  ;;  %v743_v63 = vrot.slane %v739_v9, 1  ;;  %v594_v10 = vmul.f32 %v592_v12, %v2408_v50 }
 0x101   : > { %v354_v32 = vsel %vm353_vm5, %v350_v16, %v352_v54  ;;  %v355_v18 = vsel %vm353_vm5, %v352_v54, %v350_v16  ;;  %v463_v20 = vadd.f32 %v459_v61, %v452_v19  ;;  %v746_v59 = vadd.f32 %v742_v60, %v735_v37 }
 0x102   : > { %v2460_v58 = vmul.f32 %v359_v0, %v355_v18  ;;  %v2464_v14 = vmul.f32 %v360_v1, %v354_v32  ;;  %v597_v16 = vmul.f32 %v595_v6, %v2408_v50  ;;  %v2475_v61 = vmul.f32 %v626_v31, %v2355_v13 }
 0x103   : > { %v2480_v0 = vmul.f32 %v629_v17, %v2355_v13  ;;  %v747_v54 = vadd.f32 %v743_v63, %v736_v51 }
 0x104   : > { %v469_v56 = vmul.f32 %v467_v21, %v2464_v14  ;;  %v472_v1 = vmul.f32 %v470_v22, %v2464_v14  ;;  %v609_v12 = vmul.f32 %v608_v24, %v2460_v58  ;;  %v612_v6 = vmul.f32 %v611_v30, %v2460_v58 }
 0x105   : > { %v468_v31 = vmul.f32 %v467_v21, %v2460_v58  ;;  %v471_v17 = vmul.f32 %v470_v22, %v2460_v58  ;;  %v751_v60 = vmul.f32 %v750_v35, %v2460_v58  ;;  %v754_v19 = vmul.f32 %v753_v36, %v2460_v58 }
 0x106   : > { %v476_v37 = vrot.slane %v472_v1, 1  ;;  %v616_v9 = vrot.slane %v612_v6, 1  ;;  %v752_v32 = vmul.f32 %v750_v35, %v2464_v14  ;;  %v755_v22 = vmul.f32 %v753_v36, %v2464_v14 }
 0x107   : > { %v475_v21 = vrot.slane %v471_v17, 1  ;;  %v758_v18 = vrot.slane %v754_v19, 1  ;;  %v601_v15 = vrot.slane %v597_v16, 1  ;;  %v2516_v7 = vmul.f32 %v608_v24, %v2464_v14 }
 0x108   : > { %v394_v29 = vpop.permute.xlu1 %393  ;;  %v392_v5 = vpop.permute.xlu0 %391  ;;  %v480_v23 = vadd.f32 %v476_v37, %v469_v56  ;;  %v620_v62 = vadd.f32 %v616_v9, %v609_v12  ;;  %v2521_v51 = vmul.f32 %v611_v30, %v2464_v14  ;;  %v759_v17 = vrot.slane %v755_v22, 1 }
 0x109   : > { %v396_v35 = vsel %vm395_vm6, %v392_v5, %v394_v29  ;;  %v397_v36 = vsel %vm395_vm6, %v394_v29, %v392_v5  ;;  %v479_v63 = vadd.f32 %v475_v21, %v468_v31  ;;  %v762_v16 = vadd.f32 %v758_v18, %v751_v60  ;;  %v413_v29 = vpop.permute.xlu2 %412 }
 0x10a   : > { %v2529_v24 = vmul.f32 %v401_v39, %v396_v35  ;;  %v2533_v30 = vmul.f32 %v402_v40, %v397_v36  ;;  %v482_v56 = vadd.f32 %v480_v23, %v464_v52  ;;  %v622_v1 = vadd.f32 %v620_v62, %v604_v2 }
 0x10b   : > { %v481_v12 = vadd.f32 %v479_v63, %v463_v20  ;;  %v764_v6 = vadd.f32 %v762_v16, %v746_v59  ;;  %v2535_v5 = vadd.f32 %v601_v15, %v594_v10  ;;  %v3172_v9 = vstv %s2288_s1 }
 0x10c   : > { %v500_v31 = vadd.f32 %v2396_v34, %v482_v56  ;;  %v523_v39 = vmul.f32 %v521_v47, %v2533_v30  ;;  %v526_v25 = vmul.f32 %v524_v43, %v2533_v30  ;;  %v640_v40 = vadd.f32 %v2398_v55, %v622_v1 }
 0x10d   : > { %v663_v62 = vmul.f32 %v662_v49, %v2529_v24  ;;  %v666_v23 = vmul.f32 %v665_v44, %v2529_v24  ;;  %v499_v2 = vadd.f32 %v2411_v45, %v481_v12  ;;  %v522_v34 = vmul.f32 %v521_v47, %v2529_v24 }
 0x10e   : > { %v518_v52 = vadd.f32 %v514_v46, %v500_v31  ;;  %v530_v20 = vrot.slane %v526_v25, 1  ;;  %v658_v55 = vadd.f32 %v654_v48, %v640_v40  ;;  %v525_v15 = vmul.f32 %v524_v43, %v2529_v24 }
 0x10f   : > { %v670_v59 = vrot.slane %v666_v23, 1  ;;  %v517_v10 = vadd.f32 %v513_v53, %v499_v2  ;;  %v782_v45 = vadd.f32 %v2414_v8, %v764_v6  ;;  %v3171_v47 = vstv %s2294_s30  ;;  %s2764_s30 = sld [smem:[#allocation8 + $0x26]] }
 0x110   : > { %v805_v60 = vmul.f32 %v3171_v47, %v2529_v24  ;;  %v415_v19 = vpop.permute.xlu0 %414  ;;  %v534_v37 = vadd.f32 %v530_v20, %v523_v39  ;;  %v529_v46 = vrot.slane %v525_v15, 1  ;;  %v808_v48 = vmul.f32 %v3172_v9, %v2529_v24 }
 0x111   : > { %v763_v43 = vadd.f32 %v759_v17, %v752_v32  ;;  %v417_v26 = vsel %vm416_vm7, %v413_v29, %v415_v19  ;;  %v418_v53 = vsel %vm416_vm7, %v415_v19, %v413_v29  ;;  %v674_v8 = vadd.f32 %v670_v59, %v663_v62  ;;  %v436_v15 = vpop.permute.xlu2 %435 }
 0x112   : > { %v3173_v21 = vperm.slane %v2319_v38, 0  ;;  %v3174_v22 = vperm.slane %v2325_v42, 0  ;;  %v3175_v36 = vperm.slane %v2325_v42, 1  ;;  %v536_v63 = vadd.f32 %v534_v37, %v518_v52 }
 0x113   : > { %v533_v16 = vadd.f32 %v529_v46, %v522_v34  ;;  %v676_v56 = vadd.f32 %v674_v8, %v658_v55  ;;  %v812_v1 = vrot.slane %v808_v48, 1  ;;  %v765_v12 = vadd.f32 %v763_v43, %v747_v54 }
 0x114   : > { %v800_v18 = vadd.f32 %v3173_v21, %v782_v45  ;;  %v2580_v35 = vmul.f32 %v3174_v22, %v417_v26  ;;  %v2584_v32 = vmul.f32 %v3175_v36, %v418_v53  ;;  %v3177_v6 = vmov %v3171_v47 }
 0x115   : > { %v806_v17 = vmul.f32 %v3177_v6, %v2533_v30  ;;  %v3178_v29 = vstv %s2235_s3  ;;  %v3179_v39 = vstv %s2237_s20  ;;  %v3180_v42 = vstv %s2300_s12  ;;  %s2634_s3 = sld [smem:[#allocation8 + $0x1c]] }
 0x116   : > { %v541_v31 = vmul.f32 %v3178_v29, %v2584_v32  ;;  %v544_v25 = vmul.f32 %v3179_v39, %v2584_v32  ;;  %v681_v40 = vmul.f32 %v3180_v42, %v2580_v35  ;;  %v3181_v62 = vstv %s2308_s18  ;;  %s2677_s20 = sld [smem:[#allocation8 + $0x4f]] }
 0x117   : > { %v684_v23 = vmul.f32 %v3181_v62, %v2580_v35  ;;  %v535_v2 = vadd.f32 %v533_v16, %v517_v10  ;;  %v3182_v34 = vmov %v3178_v29  ;;  %v3183_v52 = vmov %v3179_v39 }
 0x118   : > { %v540_v54 = vmul.f32 %v3182_v34, %v2580_v35  ;;  %v543_v20 = vmul.f32 %v3183_v52, %v2580_v35  ;;  %v816_v55 = vadd.f32 %v812_v1, %v805_v60  ;;  %v548_v59 = vrot.slane %v544_v25, 1  ;;  %v434_v53 = vpop.permute.xlu1 %433 }
 0x119   : > { %v688_v45 = vrot.slane %v684_v23, 1  ;;  %v3184_v47 = vstv %s3176_s0  ;;  %v3185_v37 = vstv %s2333_s4  ;;  %v783_v10 = vadd.f32 %v2450_v4, %v765_v12  ;;  %s2792_s4 = sld [smem:[#allocation8 + $0x28]] }
 0x11a   : > { %v823_v19 = vmul.f32 %v3184_v47, %v2580_v35  ;;  %v826_v46 = vmul.f32 %v3185_v37, %v2580_v35  ;;  %v547_v9 = vrot.slane %v543_v20, 1  ;;  %v818_v48 = vadd.f32 %v816_v55, %v800_v18  ;;  %s2818_s0 = sld [smem:[#allocation8 + $0x5a]] }
 0x11b   : > { %v3186_v43 = vstv %s2288_s1  ;;  %v552_v8 = vadd.f32 %v548_v59, %v541_v31  ;;  %v692_v60 = vadd.f32 %v688_v45, %v681_v40  ;;  %v3187_v22 = vmov %v3184_v47  ;;  %s2758_s1 = sld [smem:[#allocation8 + $0x56]] }
 0x11c   : > { %v809_v26 = vmul.f32 %v3186_v43, %v2533_v30  ;;  %v830_v21 = vrot.slane %v826_v46, 1  ;;  %v824_v36 = vmul.f32 %v3187_v22, %v2584_v32  ;;  %v438_v16 = vsel %vm437_vm8, %v434_v53, %v436_v15 }
 0x11d   : > { %v439_v4 = vsel %vm437_vm8, %v436_v15, %v434_v53  ;;  %v551_v18 = vadd.f32 %v547_v9, %v540_v54  ;;  %v3188_v1 = vperm.slane %v2319_v38, 2  ;;  %v3189_v6 = vperm.slane %v2343_v3, 0 }
 0x11e   : > { %v3190_v31 = vperm.slane %v2343_v3, 1  ;;  %v554_v25 = vadd.f32 %v552_v8, %v536_v63  ;;  %v694_v42 = vadd.f32 %v692_v60, %v676_v56  ;;  %v834_v62 = vadd.f32 %v830_v21, %v823_v19 }
 0x11f   : > { %v801_v12 = vadd.f32 %v3188_v1, %v783_v10  ;;  %v2628_v29 = vmul.f32 %v3189_v6, %v438_v16  ;;  %v553_v40 = vadd.f32 %v551_v18, %v535_v2  ;;  %v813_v38 = vrot.slane %v809_v26, 1 }
 0x120   : > { %v2632_v39 = vmul.f32 %v3190_v31, %v439_v4  ;;  %v3191_v23 = vmov %v3185_v37  ;;  %v3192_v54 = vstv %s2345_s23  ;;  %v3193_v52 = vstv %s2359_s24  ;;  %s2679_s24 = sld [smem:[#allocation8 + $0x1f]] }
 0x121   : > { %v827_v34 = vmul.f32 %v3191_v23, %v2584_v32  ;;  %v3194_v63 = vstv %s2365_s6  ;;  %v3195_v2 = vstv %s2377_s19  ;;  %v3196_v15 = vmov %v3192_v54  ;;  %s2799_s23 = sld [smem:[#allocation8 + $0x59]] }
 0x122   : > { %v559_v3 = vmul.f32 %v3192_v54, %v2632_v39  ;;  %v562_v20 = vmul.f32 %v3193_v52, %v2632_v39  ;;  %v699_v56 = vmul.f32 %v3194_v63, %v2628_v29  ;;  %v702_v55 = vmul.f32 %v3195_v2, %v2628_v29 }
 0x123   : > { %v558_v59 = vmul.f32 %v3196_v15, %v2628_v29  ;;  %v3197_v45 = vmov %v3193_v52  ;;  %v836_v19 = vadd.f32 %v834_v62, %v818_v48  ;;  %v3198_v37 = vstv %s2390_s14  ;;  %s2810_s14 = sld [smem:[#allocation8 + $0x29]] }
 0x124   : > { %v561_v47 = vmul.f32 %v3197_v45, %v2628_v29  ;;  %v841_v46 = vmul.f32 %v3198_v37, %v2628_v29  ;;  %v566_v9 = vrot.slane %v562_v20, 1  ;;  %v706_v10 = vrot.slane %v702_v55, 1 }
 0x125   : > { %v3199_v43 = vstv %s2400_s28  ;;  %v817_v53 = vadd.f32 %v813_v38, %v806_v17  ;;  %v831_v60 = vrot.slane %v827_v34, 1  ;;  %v3200_v21 = vmov %v3198_v37  ;;  %s2785_s28 = sld [smem:[#allocation8 + $0x58]] }
 0x126   : > { %v844_v26 = vmul.f32 %v3199_v43, %v2628_v29  ;;  %v565_v8 = vrot.slane %v561_v47, 1  ;;  %v842_v22 = vmul.f32 %v3200_v21, %v2632_v39  ;;  %v3201_v48 = vmov %v3199_v43 }
 0x127   : > { %v845_v16 = vmul.f32 %v3201_v48, %v2632_v39  ;;  %v570_v4 = vadd.f32 %v566_v9, %v559_v3  ;;  %v710_v18 = vadd.f32 %v706_v10, %v699_v56  ;;  %v819_v6 = vadd.f32 %v817_v53, %v801_v12 }
 0x128   : > { %v848_v1 = vrot.slane %v844_v26, 1  ;;  %v569_v31 = vadd.f32 %v565_v8, %v558_v59  ;;  %v835_v17 = vadd.f32 %v831_v60, %v824_v36  ;;  %v617_v38 = vrot.slane %v2521_v51, 1 }
 0x129   : > { %v849_v62 = vrot.slane %v845_v16, 1  ;;  %v572_v23 = vadd.f32 %v570_v4, %v554_v25  ;;  %v712_v34 = vadd.f32 %v710_v18, %v694_v42  ;;  %v635_v52 = vrot.slane %v2480_v0, 1 }
 0x12a   : > { %v852_v54 = vadd.f32 %v848_v1, %v841_v46  ;;  %v571_v3 = vadd.f32 %v569_v31, %v553_v40  ;;  %v837_v20 = vadd.f32 %v835_v17, %v819_v6  ;;  %v621_v36 = vadd.f32 %v617_v38, %v2516_v7 }
 0x12b   : > { %v853_v12 = vadd.f32 %v849_v62, %v842_v22  ;;  %575 = vrot.lane.b32.xlu1 %v572_v23, %s2027_s13  ;;  %714 = vrot.lane.b32.xlu2 %v712_v34, %s2028_s25  ;;  %v639_v51 = vadd.f32 %v635_v52, %v2475_v61  ;;  %v655_v25 = vperm.slane %v2306_v27, 2  ;;  %v664_v7 = vmul.f32 %v662_v49, %v2533_v30 }
 0x12c   : > { %v854_v0 = vadd.f32 %v852_v54, %v836_v19  ;;  %573 = vrot.lane.b32.xlu0 %v571_v3, %s2027_s13  ;;  %v623_v40 = vadd.f32 %v621_v36, %v2535_v5  ;;  %v667_v63 = vmul.f32 %v665_v44, %v2533_v30  ;;  %v3202_v56 = vstv %s2300_s12  ;;  %s2769_s12 = sld [smem:[#allocation8 + $0x57]]  ;;  %s2030_s13 = smov 112  }
 0x12d   : > { %v855_v42 = vadd.f32 %v853_v12, %v837_v20  ;;  %v682_v61 = vmul.f32 %v3202_v56, %v2584_v32  ;;  %v3203_v27 = vstv %s2308_s18  ;;  %v3204_v2 = vstv %s2365_s6  ;;  %s2735_s6 = sld [smem:[#allocation8 + $0x53]] }
 0x12e   : > { %v685_v49 = vmul.f32 %v3203_v27, %v2584_v32  ;;  %v700_v55 = vmul.f32 %v3204_v2, %v2632_v39  ;;  %v3205_v15 = vstv %s2377_s19  ;;  %v1011_v59 = vstv %s2634_s3  ;;  %s2729_s19 = sld [smem:[#allocation8 + $0x22]] }
 0x12f   : > { %v703_v5 = vmul.f32 %v3205_v15, %v2632_v39  ;;  %v641_v44 = vadd.f32 %v639_v51, %v623_v40  ;;  %v671_v45 = vrot.slane %v667_v63, 1  ;;  %v1013_v47 = vmul.f32 %v1011_v59, %v2408_v50  ;;  %s2774_s18 = sld [smem:[#allocation8 + $0x27]] }
 0x130   : > { %v1014_v19 = vstv %s2639_s15  ;;  %v689_v37 = vrot.slane %v685_v49, 1  ;;  %v1027_v10 = vstv %s2653_s16  ;;  %v1030_v8 = vstv %s2664_s17  ;;  %s2890_s3 = sld [smem:[#allocation8 + $0x2d]] }
 0x131   : > { %v707_v46 = vrot.slane %v703_v5, 1  ;;  %v1016_v9 = vmul.f32 %v1014_v19, %v2408_v50  ;;  %v659_v43 = vadd.f32 %v655_v25, %v641_v44  ;;  %v675_v26 = vadd.f32 %v671_v45, %v664_v7  ;;  %s2899_s15 = sld [smem:[#allocation8 + $0x5e]] }
 0x132   : > { %v1029_v53 = vmul.f32 %v1027_v10, %v2464_v14  ;;  %v693_v60 = vadd.f32 %v689_v37, %v682_v61  ;;  %v1032_v48 = vmul.f32 %v1030_v8, %v2464_v14  ;;  %v1045_v4 = vstv %s2669_s22  ;;  %s2901_s16 = sld [smem:[#allocation8 + $0x2e]] }
 0x133   : > { %v711_v21 = vadd.f32 %v707_v46, %v700_v55  ;;  %v1020_v22 = vrot.slane %v1016_v9, 1  ;;  %v677_v16 = vadd.f32 %v675_v26, %v659_v43  ;;  %v1048_v18 = vstv %s2677_s20  ;;  %856 = vrot.lane.b32.xlu1 %v854_v0, %s2029_s2  ;;  %858 = vrot.lane.b32.xlu2 %v855_v42, %s2029_s2  ;;  %s2865_s2 = sld [smem:[#allocation8 + $0x5c]] }
 0x134   : > { %v1063_v1 = vstv %s2679_s24  ;;  %v1036_v31 = vrot.slane %v1032_v48, 1  ;;  %v1047_v17 = vmul.f32 %v1045_v4, %v2355_v13  ;;  %v1050_v62 = vmul.f32 %v1048_v18, %v2355_v13  ;;  %s2842_s24 = sld [smem:[#allocation8 + $0x2a]] }
 0x135   : > { %v1024_v6 = vadd.f32 %v1020_v22, %v1013_v47  ;;  %v695_v38 = vadd.f32 %v693_v60, %v677_v16  ;;  %v1064_v23 = vmul.f32 %v1063_v1, %v2193_v41  ;;  %v1065_v34 = vstv %s2682_s29  ;;  %s2848_s29 = sld [smem:[#allocation8 + $0x5b]] }
 0x136   : > { %v1081_v54 = vstv %s2685_s10  ;;  %v1040_v52 = vadd.f32 %v1036_v31, %v1029_v53  ;;  %v1054_v3 = vrot.slane %v1050_v62, 1  ;;  %v1066_v20 = vmul.f32 %v1065_v34, %v2193_v41  ;;  %s2916_s17 = sld [smem:[#allocation8 + $0x5f]] }
 0x137   : > { %v1083_v12 = vmul.f32 %v1081_v54, %v2533_v30  ;;  %v713_v36 = vadd.f32 %v711_v21, %v695_v38  ;;  %v1084_v0 = vstv %s2688_s11  ;;  %v1099_v51 = vstv %s2717_s5  ;;  %s2918_s22 = sld [smem:[#allocation8 + $0x2f]]  ;;  %s2031_s11 = smov 96  }
 0x138   : > { %v1102_v25 = vstv %s2723_s7  ;;  %v1042_v7 = vadd.f32 %v1040_v52, %v1024_v6  ;;  %v1058_v42 = vadd.f32 %v1054_v3, %v1047_v17  ;;  %v1694_v40 = vrot.slane %v1066_v20, 9  ;;  %s2923_s20 = sld [smem:[#allocation8 + $0x60]] }
 0x139   : > { %v1086_v63 = vmul.f32 %v1084_v0, %v2533_v30  ;;  %716 = vrot.lane.b32.xlu0 %v713_v36, %s2028_s25  ;;  %v1101_v56 = vmul.f32 %v1099_v51, %v2584_v32  ;;  %v1104_v61 = vmul.f32 %v1102_v25, %v2584_v32  ;;  %v1117_v27 = vstv %s2729_s19  ;;  %s2857_s25 = sld [smem:[#allocation8 + $0x2b]] }
 0x13a   : > { %v1120_v49 = vstv %s2735_s6  ;;  %v1060_v2 = vadd.f32 %v1058_v42, %v1042_v7  ;;  %v2787_v55 = vadd.f32 %v1694_v40, %v1064_v23  ;;  %v1119_v5 = vmul.f32 %v1117_v27, %v2632_v39  ;;  %s2926_s10 = sld [smem:[#allocation8 + $0x30]] }
 0x13b   : > { %v1090_v15 = vrot.slane %v1086_v63, 1  ;;  %v1108_v44 = vrot.slane %v1104_v61, 1  ;;  %v1122_v45 = vmul.f32 %v1120_v49, %v2632_v39  ;;  %v1153_v47 = vstv %s2696_s27  ;;  %s2933_s5 = sld [smem:[#allocation8 + $0x61]]  ;;  %s2032_s27 = smov 80  }
 0x13c   : > { %v1156_v37 = vstv %s2705_s26  ;;  %v1074_v46 = vperm.slane %v2787_v55, 2  ;;  %v1154_v43 = vmul.f32 %v1153_v47, %v2404_v28  ;;  %v1169_v21 = vstv %s2740_s8  ;;  %s1674_s26 = sld [smem:[#allocation8 + $0x47]] }
 0x13d   : > { %v1094_v9 = vadd.f32 %v1090_v15, %v1083_v12  ;;  %v1157_v26 = vmul.f32 %v1156_v37, %v2404_v28  ;;  %v1112_v53 = vadd.f32 %v1108_v44, %v1101_v56  ;;  %v1126_v60 = vrot.slane %v1122_v45, 1  ;;  %s1672_s7 = sld [smem:[#allocation8 + $0x46]] }
 0x13e   : > { %v1172_v22 = vstv %s2745_s9  ;;  %v1078_v48 = vadd.f32 %v1074_v46, %v1060_v2  ;;  %v1170_v1 = vmul.f32 %v1169_v21, %v2460_v58  ;;  %v1187_v17 = vstv %s2753_s21  ;;  %s3007_s19 = sld [smem:[#allocation8 + $0x15]] }
 0x13f   : > { %v1161_v16 = vrot.slane %v1157_v26, 1  ;;  %v1173_v6 = vmul.f32 %v1172_v22, %v2460_v58  ;;  %v1130_v31 = vadd.f32 %v1126_v60, %v1119_v5  ;;  %v1190_v62 = vstv %s2758_s1  ;;  %s1676_s6 = sld [smem:[#allocation8 + $0x48]] }
 0x140   : > { %v1205_v38 = vstv %s2764_s30  ;;  %v1096_v23 = vadd.f32 %v1094_v9, %v1078_v48  ;;  %v1188_v3 = vmul.f32 %v1187_v17, %v2351_v11  ;;  %v1191_v20 = vmul.f32 %v1190_v62, %v2351_v11  ;;  %s2874_s30 = sld [smem:[#allocation8 + $0x2c]] }
 0x141   : > { %v1165_v34 = vadd.f32 %v1161_v16, %v1154_v43  ;;  %v1177_v52 = vrot.slane %v1173_v6, 1  ;;  %v1206_v12 = vmul.f32 %v1205_v38, %v2193_v41  ;;  %v1207_v36 = vstv %s2769_s12  ;;  %s2882_s12 = sld [smem:[#allocation8 + $0x5d]] }
 0x142   : > { %v1223_v7 = vstv %s2774_s18  ;;  %v1114_v42 = vadd.f32 %v1112_v53, %v1096_v23  ;;  %v1208_v63 = vmul.f32 %v1207_v36, %v2193_v41  ;;  %v1195_v61 = vrot.slane %v1191_v20, 1  ;;  %s1678_s8 = sld [smem:[#allocation8 + $0x49]] }
 0x143   : > { %v1181_v40 = vadd.f32 %v1177_v52, %v1170_v1  ;;  %v1224_v56 = vmul.f32 %v1223_v7, %v2529_v24  ;;  %v1226_v2 = vstv %s2785_s28  ;;  %v1241_v15 = vstv %s2792_s4  ;;  %s3009_s9 = sld [smem:[#allocation8 + $0x16]] }
 0x144   : > { %v1244_v5 = vstv %s2799_s23  ;;  %v1132_v44 = vadd.f32 %v1130_v31, %v1114_v42  ;;  %v1709_v46 = vrot.slane %v1208_v63, 9  ;;  %v1227_v9 = vmul.f32 %v1226_v2, %v2529_v24  ;;  %s3011_s21 = sld [smem:[#allocation8 + $0x18]] }
 0x145   : > { %v1183_v45 = vadd.f32 %v1181_v40, %v1165_v34  ;;  %v1199_v43 = vadd.f32 %v1195_v61, %v1188_v3  ;;  %v1245_v26 = vmul.f32 %v1244_v5, %v2580_v35  ;;  %v1259_v53 = vstv %s2810_s14  ;;  %s3013_s1 = sld [smem:[#allocation8 + $0x17]] }
 0x146   : > { %1135 = vrot.lane.b32.xlu1 %v1132_v44, %s2030_s13  ;;  %v2851_v60 = vadd.f32 %v1709_v46, %v1206_v12  ;;  %v1231_v48 = vrot.slane %v1227_v9, 1  ;;  %v1242_v16 = vmul.f32 %v1241_v15, %v2580_v35  ;;  %v1262_v1 = vstv %s2818_s0  ;;  %s3017_s18 = sld [smem:[#allocation8 + $0x4a]] }
 0x147   : > { %v1201_v6 = vadd.f32 %v1199_v43, %v1183_v45  ;;  %v1249_v31 = vrot.slane %v1245_v26, 1  ;;  %v1260_v38 = vmul.f32 %v1259_v53, %v2628_v29  ;;  %v1263_v23 = vmul.f32 %v1262_v1, %v2628_v29  ;;  %s3023_s28 = sld [smem:[#allocation8 + $0x19]] }
 0x148   : > { %v1215_v34 = vperm.slane %v2851_v60, 0  ;;  %v1235_v52 = vadd.f32 %v1231_v48, %v1224_v56  ;;  %v1012_v3 = vmul.f32 %v1011_v59, %v2404_v28  ;;  %v1015_v20 = vmul.f32 %v1014_v19, %v2404_v28  ;;  %s3032_s4 = sld [smem:[#allocation8 + $0x4b]] }
 0x149   : > { %v1253_v12 = vadd.f32 %v1249_v31, %v1242_v16  ;;  %v1267_v36 = vrot.slane %v1263_v23, 1  ;;  %v1028_v42 = vmul.f32 %v1027_v10, %v2460_v58  ;;  %v1031_v40 = vmul.f32 %v1030_v8, %v2460_v58  ;;  %s3036_s23 = sld [smem:[#allocation8 + $0x1a]] }
 0x14a   : > { %v1219_v63 = vadd.f32 %v1215_v34, %v1201_v6  ;;  %v1019_v56 = vrot.slane %v1015_v20, 1  ;;  %v1046_v59 = vmul.f32 %v1045_v4, %v2351_v11  ;;  %v1049_v19 = vmul.f32 %v1048_v18, %v2351_v11  ;;  %s3042_s14 = sld [smem:[#allocation8 + $0x4c]] }
 0x14b   : > { %v1035_v61 = vrot.slane %v1031_v40, 1  ;;  %v1073_v10 = vperm.slane %v2787_v55, 0  ;;  %v1082_v8 = vmul.f32 %v1081_v54, %v2529_v24  ;;  %v1085_v44 = vmul.f32 %v1084_v0, %v2529_v24  ;;  %s3050_s0 = sld [smem:[#allocation8 + $0x1b]] }
 0x14c   : > { %v1237_v4 = vadd.f32 %v1235_v52, %v1219_v63  ;;  %v1271_v45 = vadd.f32 %v1267_v36, %v1260_v38  ;;  %v1023_v46 = vadd.f32 %v1019_v56, %v1012_v3  ;;  %v1053_v18 = vrot.slane %v1049_v19, 1 }
 0x14d   : > { %v1039_v9 = vadd.f32 %v1035_v61, %v1028_v42  ;;  %v1089_v43 = vrot.slane %v1085_v44, 1  ;;  %v1100_v55 = vmul.f32 %v1099_v51, %v2580_v35  ;;  %v1103_v54 = vmul.f32 %v1102_v25, %v2580_v35 }
 0x14e   : > { %v1255_v26 = vadd.f32 %v1253_v12, %v1237_v4  ;;  %v1118_v0 = vmul.f32 %v1117_v27, %v2628_v29  ;;  %v1121_v48 = vmul.f32 %v1120_v49, %v2628_v29  ;;  %v1295_v16 = vstv %s2842_s24  ;;  %s3206_s24 = sld [smem:[#allocation21_spill]] }
 0x14f   : > { %v1041_v6 = vadd.f32 %v1039_v9, %v1023_v46  ;;  %v1057_v31 = vadd.f32 %v1053_v18, %v1046_v59  ;;  %v1093_v38 = vadd.f32 %v1089_v43, %v1082_v8  ;;  %v1107_v23 = vrot.slane %v1103_v54, 1 }
 0x150   : > { %v1273_v51 = vadd.f32 %v1271_v45, %v1255_v26  ;;  %v1296_v25 = vmul.f32 %v1295_v16, %v2404_v28  ;;  %v1298_v34 = vstv %s2848_s29  ;;  %v1311_v27 = vstv %s2857_s25  ;;  %s3207_s29 = sld [smem:[#allocation27_spill]] }
 0x151   : > { %v1059_v49 = vadd.f32 %v1057_v31, %v1041_v6  ;;  %v1111_v52 = vadd.f32 %v1107_v23, %v1100_v55  ;;  %v1125_v3 = vrot.slane %v1121_v48, 1  ;;  %v1299_v20 = vmul.f32 %v1298_v34, %v2404_v28 }
 0x152   : > { %1275 = vrot.lane.b32.xlu2 %v1273_v51, %s2031_s11  ;;  %v1312_v12 = vmul.f32 %v1311_v27, %v2460_v58  ;;  %v1314_v36 = vstv %s2865_s2  ;;  %v1329_v42 = vstv %s2874_s30  ;;  %v1332_v40 = vstv %s2882_s12  ;;  %s3209_s12 = sld [smem:[#allocation33_spill]] }
 0x153   : > { %v1077_v63 = vadd.f32 %v1073_v10, %v1059_v49  ;;  %v1303_v56 = vrot.slane %v1299_v20, 1  ;;  %v1315_v59 = vmul.f32 %v1314_v36, %v2460_v58  ;;  %v1330_v19 = vmul.f32 %v1329_v42, %v2351_v11 }
 0x154   : > { %v1333_v61 = vmul.f32 %v1332_v40, %v2351_v11  ;;  %v1347_v8 = vstv %s2890_s3  ;;  %v1349_v44 = vstv %s2899_s15  ;;  %v1365_v4 = vstv %s2901_s16  ;;  %s1739_s25 = sshll.u32 %s3206_s24, 3 }
 0x155   : > { %v1095_v45 = vadd.f32 %v1093_v38, %v1077_v63  ;;  %v1129_v46 = vadd.f32 %v1125_v3, %v1118_v0  ;;  %v1307_v18 = vadd.f32 %v1303_v56, %v1296_v25  ;;  %v1319_v9 = vrot.slane %v1315_v59, 1 }
 0x156   : > { %v1337_v43 = vrot.slane %v1333_v61, 1  ;;  %v1348_v55 = vmul.f32 %v1347_v8, %v2193_v41  ;;  %v1350_v10 = vmul.f32 %v1349_v44, %v2193_v41  ;;  %v1368_v54 = vstv %s2916_s17 }
 0x157   : > { %v1113_v26 = vadd.f32 %v1111_v52, %v1095_v45  ;;  %v1323_v48 = vadd.f32 %v1319_v9, %v1312_v12  ;;  %v1366_v6 = vmul.f32 %v1365_v4, %v2529_v24  ;;  %v1369_v31 = vmul.f32 %v1368_v54, %v2529_v24 }
 0x158   : > { %v1341_v23 = vadd.f32 %v1337_v43, %v1330_v19  ;;  %v1724_v51 = vrot.slane %v1350_v10, 9  ;;  %v1383_v38 = vstv %s2918_s22  ;;  %v1386_v0 = vstv %s2923_s20  ;;  %s1506_s3 = scalar_lea.hbm %s3209_s12, %s1739_s25 }
 0x159   : > { %v1131_v25 = vadd.f32 %v1129_v46, %v1113_v26  ;;  %v1325_v49 = vadd.f32 %v1323_v48, %v1307_v18  ;;  %v1373_v3 = vrot.slane %v1369_v31, 1  ;;  %v1387_v20 = vmul.f32 %v1386_v0, %v2580_v35  ;;  %s1510_s20 = sshll.u32 %s1506_s3, 4  ;;  %s1511_s20 = int_to_ptr.hbm [resolvable:$true] %s1510_s20 }
 0x15a   : > { %v1355_v63 = vadd.f32 %v1724_v51, %v1348_v55  ;;  %v1401_v56 = vstv %s2926_s10  ;;  %v1404_v59 = vstv %s2933_s5  ;;  %v1384_v12 = vmul.f32 %v1383_v38, %v2580_v35 }
 0x15b   : > { %1133 = vrot.lane.b32.xlu0 %v1131_v25, %s2030_s13  ;;  %v1343_v52 = vadd.f32 %v1341_v23, %v1325_v49  ;;  %v1391_v61 = vrot.slane %v1387_v20, 1  ;;  %v1297_v8 = vmul.f32 %v1295_v16, %v2408_v50  ;;  %v1377_v44 = vadd.f32 %v1373_v3, %v1366_v6  ;;  %s3208_s13 = sld [smem:[#allocation26_spill]] }
 0x15c   : > { %v1357_v19 = vperm.slane %v1355_v63, 0  ;;  %v1405_v45 = vmul.f32 %v1404_v59, %v2628_v29  ;;  %v1300_v46 = vmul.f32 %v1298_v34, %v2408_v50  ;;  %v1402_v9 = vmul.f32 %v1401_v56, %v2628_v29 }
 0x15d   : > { %v1395_v18 = vadd.f32 %v1391_v61, %v1384_v12  ;;  %v1316_v43 = vmul.f32 %v1314_v36, %v2464_v14  ;;  %v1334_v55 = vmul.f32 %v1332_v40, %v2355_v13  ;;  %v1331_v31 = vmul.f32 %v1329_v42, %v2355_v13 }
 0x15e   : > { %v1361_v10 = vadd.f32 %v1357_v19, %v1343_v52  ;;  %v1409_v26 = vrot.slane %v1405_v45, 1  ;;  %v1304_v48 = vrot.slane %v1300_v46, 1  ;;  %v1313_v16 = vmul.f32 %v1311_v27, %v2464_v14 }
 0x15f   : > { %v1320_v23 = vrot.slane %v1316_v43, 1  ;;  %v1338_v6 = vrot.slane %v1334_v55, 1  ;;  %v1370_v34 = vmul.f32 %v1368_v54, %v2533_v30  ;;  %v1367_v49 = vmul.f32 %v1365_v4, %v2533_v30 }
 0x160   : > { %v1379_v51 = vadd.f32 %v1377_v44, %v1361_v10  ;;  %v1413_v25 = vadd.f32 %v1409_v26, %v1402_v9  ;;  %v1308_v36 = vadd.f32 %v1304_v48, %v1297_v8  ;;  %v1388_v20 = vmul.f32 %v1386_v0, %v2584_v32 }
 0x161   : > { %v1324_v40 = vadd.f32 %v1320_v23, %v1313_v16  ;;  %v1374_v3 = vrot.slane %v1370_v34, 1  ;;  %v1342_v42 = vadd.f32 %v1338_v6, %v1331_v31  ;;  %v1358_v12 = vperm.slane %v1355_v63, 2  ;;  %s3211_s16 = sshll.u32 %s3208_s13, 3  ;;  %s1495_s10 = scalar_lea.sflag [#allocation6], %s3208_s13 }
 0x162   : > { %v1397_v52 = vadd.f32 %v1395_v18, %v1379_v51  ;;  %v1406_v27 = vmul.f32 %v1404_v59, %v2632_v39  ;;  %v1392_v19 = vrot.slane %v1388_v20, 1  ;;  %v1155_v54 = vmul.f32 %v1153_v47, %v2408_v50  ;;  %s258_s17 = scalar_lea.vmem [#allocation12], %s3211_s16 }
 0x163   : > { %v1326_v61 = vadd.f32 %v1324_v40, %v1308_v36  ;;  %v1158_v4 = vmul.f32 %v1156_v37, %v2408_v50  ;;  %v1385_v44 = vmul.f32 %v1383_v38, %v2584_v32  ;;  %v1403_v0 = vmul.f32 %v1401_v56, %v2632_v39  ;;  %s1508_s22 = sshll.u32 %s258_s17, 4  ;;  %s1509_s22 = int_to_ptr.vmem [resolvable:$true] %s1508_s22 }
 0x164   : > { %v1415_v8 = vadd.f32 %v1413_v25, %v1397_v52  ;;  %v1174_v63 = vmul.f32 %v1172_v22, %v2464_v14  ;;  %v1378_v45 = vadd.f32 %v1374_v3, %v1367_v49  ;;  %v1410_v46 = vrot.slane %v1406_v27, 1 }
 0x165   : > { %v1344_v59 = vadd.f32 %v1342_v42, %v1326_v61  ;;  %v1162_v18 = vrot.slane %v1158_v4, 1  ;;  %v1171_v47 = vmul.f32 %v1169_v21, %v2464_v14  ;;  %v1189_v38 = vmul.f32 %v1187_v17, %v2355_v13 }
 0x166   : > { %1417 = vrot.lane.b32.xlu1 %v1415_v8, %s2032_s27  ;;  %v1178_v37 = vrot.slane %v1174_v63, 1  ;;  %v1192_v22 = vmul.f32 %v1190_v62, %v2355_v13  ;;  %v1396_v9 = vadd.f32 %v1392_v19, %v1385_v44  ;;  %v1228_v55 = vmul.f32 %v1226_v2, %v2533_v30 }
 0x167   : > { %v1362_v56 = vadd.f32 %v1358_v12, %v1344_v59  ;;  %v1166_v43 = vadd.f32 %v1162_v18, %v1155_v54  ;;  %v1225_v48 = vmul.f32 %v1223_v7, %v2533_v30  ;;  %v1246_v21 = vmul.f32 %v1244_v5, %v2584_v32 }
 0x168   : > { %v1182_v10 = vadd.f32 %v1178_v37, %v1171_v47  ;;  %v1196_v26 = vrot.slane %v1192_v22, 1  ;;  %v1414_v17 = vadd.f32 %v1410_v46, %v1403_v0  ;;  %v1232_v16 = vrot.slane %v1228_v55, 1 }
 0x169   : > { %v1380_v31 = vadd.f32 %v1378_v45, %v1362_v56  ;;  %v1264_v62 = vmul.f32 %v1262_v1, %v2632_v39  ;;  %v1216_v2 = vperm.slane %v2851_v60, 2  ;;  %v1250_v34 = vrot.slane %v1246_v21, 1 }
 0x16a   : > { %v1184_v23 = vadd.f32 %v1182_v10, %v1166_v43  ;;  %v1200_v6 = vadd.f32 %v1196_v26, %v1189_v38  ;;  %v1236_v49 = vadd.f32 %v1232_v16, %v1225_v48  ;;  %v1243_v7 = vmul.f32 %v1241_v15, %v2584_v32 }
 0x16b   : > { %v1398_v51 = vadd.f32 %v1396_v9, %v1380_v31  ;;  %v1268_v36 = vrot.slane %v1264_v62, 1  ;;  %v1261_v20 = vmul.f32 %v1259_v53, %v2632_v39  ;;  %v895_v15 = vstv %s1674_s26 }
 0x16c   : > { %v1202_v25 = vadd.f32 %v1200_v6, %v1184_v23  ;;  %v1254_v3 = vadd.f32 %v1250_v34, %v1243_v7  ;;  %v879_v53 = vstv %s1672_s7  ;;  %v896_v12 = vmul.f32 %v895_v15, %v2460_v58  ;;  %s1962_s7 = scalar_lea.hbm %s3209_s12, 16 }
 0x16d   : > { %v1416_v5 = vadd.f32 %v1414_v17, %v1398_v51  ;;  %v1272_v52 = vadd.f32 %v1268_v36, %v1261_v20  ;;  %v880_v27 = vmul.f32 %v879_v53, %v2404_v28  ;;  %v876_v61 = vstv %s3007_s19 }
 0x16e   : > { %v1220_v40 = vadd.f32 %v1216_v2, %v1202_v25  ;;  %v897_v19 = vmul.f32 %v895_v15, %v2464_v14  ;;  %v930_v54 = vstv %s1678_s8  ;;  %v892_v4 = vstv %s3009_s9 }
 0x16f   : > { %1419 = vrot.lane.b32.xlu2 %v1416_v5, %s2032_s27  ;;  %v913_v8 = vstv %s1676_s6  ;;  %v881_v44 = vmul.f32 %v879_v53, %v2408_v50  ;;  %v900_v0 = vrot.slane %v896_v12, 1  ;;  %v877_v63 = vmul.f32 %v876_v61, %v2404_v28 }
 0x170   : > { %v1238_v1 = vadd.f32 %v1236_v49, %v1220_v40  ;;  %v884_v59 = vrot.slane %v880_v27, 1  ;;  %v931_v45 = vmul.f32 %v930_v54, %v2193_v41  ;;  %v893_v18 = vmul.f32 %v892_v4, %v2460_v58 }
 0x171   : > { %v901_v47 = vrot.slane %v897_v19, 1  ;;  %v914_v37 = vmul.f32 %v913_v8, %v2351_v11  ;;  %v928_v38 = vstv %s3011_s21  ;;  %v910_v22 = vstv %s3013_s1  ;;  %v722_v19 = vld [vmem:[#allocation9 + $0x1] ss:$8 sm:$0x3] }
 0x172   : > { %v1256_v42 = vadd.f32 %v1254_v3, %v1238_v1  ;;  %v915_v56 = vmul.f32 %v913_v8, %v2355_v13  ;;  %v878_v43 = vmul.f32 %v876_v61, %v2408_v50  ;;  %v885_v55 = vrot.slane %v881_v44, 1 }
 0x173   : > { %v894_v58 = vmul.f32 %v892_v4, %v2464_v14  ;;  %v904_v10 = vadd.f32 %v900_v0, %v893_v18  ;;  %v929_v26 = vmul.f32 %v928_v38, %v2193_v41  ;;  %v1679_v48 = vrot.slane %v931_v45, 9  ;;  %v580_v0 = vld [vmem:[#allocation9] ss:$8 sm:$0x3] }
 0x174   : > { %v1274_v60 = vadd.f32 %v1272_v52, %v1256_v42  ;;  %v949_v21 = vstv %s3017_s18  ;;  %v888_v31 = vadd.f32 %v884_v59, %v877_v63  ;;  %v911_v16 = vmul.f32 %v910_v22, %v2351_v11 }
 0x175   : > { %v905_v17 = vadd.f32 %v901_v47, %v894_v58  ;;  %v918_v62 = vrot.slane %v914_v37, 1  ;;  %v912_v23 = vmul.f32 %v910_v22, %v2355_v13  ;;  %v919_v50 = vrot.slane %v915_v56, 1 }
 0x176   : > { %1277 = vrot.lane.b32.xlu0 %v1274_v60, %s2031_s11  ;;  %v889_v6 = vadd.f32 %v885_v55, %v878_v43  ;;  %v906_v2 = vadd.f32 %v904_v10, %v888_v31  ;;  %v946_v14 = vstv %s3023_s28  ;;  %v950_v34 = vmul.f32 %v949_v21, %v2529_v24  ;;  %s1956_s11 = sshra.s32 %s1511_s20, 4  ;;  %s1957_s11 = int_to_ptr.hbm [resolvable:$true] %s1956_s11 }
 0x177   : > { %v936_v41 = vadd.f32 %v1679_v48, %v929_v26  ;;  %v951_v51 = vmul.f32 %v949_v21, %v2533_v30  ;;  %v922_v49 = vadd.f32 %v918_v62, %v911_v16  ;;  %v967_v7 = vstv %s3032_s4  ;;  %v864_v21 = vld [vmem:[#allocation9 + $0x2] ss:$8 sm:$0x3]  ;;  %s1958_s5 = scalar_lea.hbm %s1957_s11, 8  ;;  %p1963_p9 = scmp.lt.s32.totalorder %s1957_s11, %s3209_s12 }
 0x178   : > { %v907_v25 = vadd.f32 %v905_v17, %v889_v6  ;;  %v923_v11 = vadd.f32 %v919_v50, %v912_v23  ;;  %v947_v36 = vmul.f32 %v946_v14, %v2529_v24  ;;  %v948_v13 = vmul.f32 %v946_v14, %v2533_v30  ;;  %p1959_p1 = scmp.ne.s32.totalorder %s1957_s11, %s1958_s5  ;;  %p1964_p10 = scmp.lt.s32.totalorder %s1962_s7, %s1958_s5 }
 0x179   : > { %v924_v40 = vadd.f32 %v922_v49, %v906_v2  ;;  %v954_v3 = vrot.slane %v950_v34, 1  ;;  %v964_v20 = vstv %s3036_s23  ;;  %v985_v1 = vstv %s3042_s14 }
 0x17a   : > { %v938_v52 = vperm.slane %v936_v41, 0  ;;  %v955_v42 = vrot.slane %v951_v51, 1  ;;  %v968_v60 = vmul.f32 %v967_v7, %v2580_v35  ;;  %v969_v15 = vmul.f32 %v967_v7, %v2584_v32  ;;  %v999_v51 = vld [vmem:[#allocation9 + $0x3] ss:$8 sm:$0x3]  ;;  %p1960_p4 = pnand %p1959_p1, %p2130_p3  ;;  %p1965_p2 = por %p1964_p10, %p1963_p9 }
 0x17b   : > { %v925_v27 = vadd.f32 %v923_v11, %v907_v25  ;;  %v939_v61 = vperm.slane %v936_v41, 2  ;;  %v965_v24 = vmul.f32 %v964_v20, %v2580_v35  ;;  %v986_v30 = vmul.f32 %v985_v1, %v2628_v29  ;;  %v1141_v11 = vld [vmem:[#allocation9 + $0x4] ss:$8 sm:$0x3] }
 0x17c   : > { %v987_v54 = vmul.f32 %v985_v1, %v2632_v39  ;;  %v958_v4 = vadd.f32 %v954_v3, %v947_v36  ;;  %v966_v8 = vmul.f32 %v964_v20, %v2584_v32  ;;  %v982_v44 = vstv %s3050_s0  ;;  %p1961_p8 = pneg %p1960_p4 }
 0x17d   : > { %v942_v63 = vadd.f32 %v938_v52, %v924_v40  ;;  %v959_v59 = vadd.f32 %v955_v42, %v948_v13  ;;  %v972_v45 = vrot.slane %v968_v60, 1  ;;  %v973_v18 = vrot.slane %v969_v15, 1 }
 0x17e   : > { %v724_v47 = vperm.slane %v722_v19, 0  ;;  %v725_v37 = vperm.slane %v722_v19, 1  ;;  %v943_v35 = vadd.f32 %v939_v61, %v925_v27  ;;  %v990_v56 = vrot.slane %v986_v30, 1  ;;  %v1283_v61 = vld [vmem:[#allocation9 + $0x5] ss:$8 sm:$0x3]  ;;  %p1966_p11 = pnand %p1965_p2, %p1961_p8 }
 0x17f   : > { %v991_v43 = vrot.slane %v987_v54, 1  ;;  %v582_v55 = vperm.slane %v580_v0, 0  ;;  %v583_v58 = vperm.slane %v580_v0, 1  ;;  %v983_v10 = vmul.f32 %v982_v44, %v2628_v29  ;;  %v1425_v30 = vld [vmem:[#allocation9 + $0x6] ss:$8 sm:$0x3] }
 0x180   : > { %v984_v32 = vmul.f32 %v982_v44, %v2632_v39  ;;  %v976_v31 = vadd.f32 %v972_v45, %v965_v24  ;;  %v977_v17 = vadd.f32 %v973_v18, %v966_v8  ;;  %v960_v23 = vadd.f32 %v958_v4, %v942_v63 }
 0x181   : > { %v961_v50 = vadd.f32 %v959_v59, %v943_v35  ;;  %v994_v6 = vadd.f32 %v990_v56, %v983_v10  ;;  %v866_v34 = vperm.slane %v864_v21, 0  ;;  %v867_v41 = vperm.slane %v864_v21, 1 }
 0x182   : > { %v995_v29 = vadd.f32 %v991_v43, %v984_v32  ;;  %v978_v49 = vadd.f32 %v976_v31, %v960_v23  ;;  %v1001_v20 = vperm.slane %v999_v51, 0  ;;  %v1002_v1 = vperm.slane %v999_v51, 1 }
 0x183   : > { %v979_v7 = vadd.f32 %v977_v17, %v961_v50  ;;  %v1143_v60 = vperm.slane %v1141_v11, 0  ;;  %v1144_v15 = vperm.slane %v1141_v11, 1  ;;  %v1285_v44 = vperm.slane %v1283_v61, 0 }
 0x184   : > { %v996_v40 = vadd.f32 %v994_v6, %v978_v49  ;;  %v1286_v0 = vperm.slane %v1283_v61, 1  ;;  %v1427_v18 = vperm.slane %v1425_v30, 0 }
 0x185   : > { %v715_v28 = vpop.permute.xlu2 %714  ;;  %v997_v3 = vadd.f32 %v995_v29, %v979_v7 }
 0x187   : > { %v1006_v24 = vmul.f32 %v1002_v1, %v997_v3 }
 0x18d   : > { %v859_v53 = vpop.permute.xlu2 %858 }
 0x19d   : > { %v3027_v46 = vpop.permute.xlu1 %575 }
 0x19e   : > { %v3038_v9 = vpop.permute.xlu0 %573 }
 0x19f   : > { %v578_v26 = vsel %vm577_vm10, %v3038_v9, %v3027_v46  ;;  %v579_v48 = vsel %vm577_vm10, %v3027_v46, %v3038_v9 }
 0x1a0   : > { %v586_v39 = vmul.f32 %v582_v55, %v579_v48  ;;  %v587_v14 = vmul.f32 %v583_v58, %v578_v26 }
 0x1a5   : > { %v857_v5 = vpop.permute.xlu1 %856 }
 0x1a6   : > { %v861_v46 = vsel %vm860_vm11, %v857_v5, %v859_v53  ;;  %v862_v9 = vsel %vm860_vm11, %v859_v53, %v857_v5  ;;  %v1005_v53 = vmul.f32 %v1001_v20, %v996_v40 }
 0x1a7   : > { %v870_v52 = vmul.f32 %v866_v34, %v862_v9  ;;  %v871_v42 = vmul.f32 %v867_v41, %v861_v46 }
 0x1ab   : > { %v717_v12 = vpop.permute.xlu0 %716 }
 0x1ac   : > { %v719_v38 = vsel %vm718_vm9, %v715_v28, %v717_v12  ;;  %v720_v22 = vsel %vm718_vm9, %v717_v12, %v715_v28  ;;  %v1276_v2 = vpop.permute.xlu2 %1275 }
 0x1ad   : > { %v728_v28 = vmul.f32 %v724_v47, %v720_v22  ;;  %v729_v16 = vmul.f32 %v725_v37, %v719_v38  ;;  %v1428_v47 = vperm.slane %v1425_v30, 1 }
 0x1af   : > { %v730_v36 = vadd.f32 %v728_v28, %v586_v39  ;;  %v731_v13 = vadd.f32 %v729_v16, %v587_v14 }
 0x1b1   : > { %v872_v19 = vadd.f32 %v870_v52, %v730_v36  ;;  %v873_v5 = vadd.f32 %v871_v42, %v731_v13 }
 0x1b3   : > { %v1007_v59 = vadd.f32 %v1005_v53, %v872_v19  ;;  %v1008_v45 = vadd.f32 %v1006_v24, %v873_v5 }
 0x1b8   : > { %v1136_v62 = vpop.permute.xlu1 %1135 }
 0x1c9   : > { %v1420_v63 = vpop.permute.xlu2 %1419 }
 0x1cd   : > { %v1134_v25 = vpop.permute.xlu0 %1133 }
 0x1ce   : > { %v1138_v12 = vsel %vm1137_vm12, %v1134_v25, %v1136_v62  ;;  %v1139_v27 = vsel %vm1137_vm12, %v1136_v62, %v1134_v25 }
 0x1cf   : > { %v1147_v54 = vmul.f32 %v1143_v60, %v1138_v12  ;;  %v1148_v4 = vmul.f32 %v1144_v15, %v1139_v27  ;;  %v1486_v27 = vld [vmem:[%s3207_s29] sm:$0xff] }
 0x1d1   : > { %v1149_v43 = vadd.f32 %v1147_v54, %v1007_v59  ;;  %v1150_v55 = vadd.f32 %v1148_v4, %v1008_v45 }
 0x1d8   : > { %v1418_v8 = vpop.permute.xlu1 %1417 }
 0x1d9   : > { %v1422_v35 = vsel %vm1421_vm13, %v1418_v8, %v1420_v63  ;;  %v1423_v38 = vsel %vm1421_vm13, %v1420_v63, %v1418_v8 }
 0x1da   : > { %v1431_v57 = vmul.f32 %v1427_v18, %v1422_v35  ;;  %v1432_v32 = vmul.f32 %v1428_v47, %v1423_v38 }
 0x1e8   : > { %v1278_v37 = vpop.permute.xlu0 %1277 }
 0x1e9   : > { %v1280_v22 = vsel %vm1279_vm14, %v1276_v2, %v1278_v37  ;;  %v1281_v56 = vsel %vm1279_vm14, %v1278_v37, %v1276_v2 }
 0x1ea   : > { %v1289_v58 = vmul.f32 %v1285_v44, %v1280_v22  ;;  %v1290_v10 = vmul.f32 %v1286_v0, %v1281_v56 }
 0x1ec   : > { %v1291_v26 = vadd.f32 %v1289_v58, %v1149_v43  ;;  %v1292_v48 = vadd.f32 %v1290_v10, %v1150_v55 }
 0x1ee   : > { %v1433_v21 = vadd.f32 %v1431_v57, %v1291_v26  ;;  %v1434_v31 = vadd.f32 %v1432_v32, %v1292_v48 }
 0x1f0   : > { %v1731_v17 = vmul.f32 -1.442695, %v1433_v21  ;;  %v1732_v28 = vmul.f32 -1.442695, %v1434_v31 }
 0x1f2   : > { %1829 = vpow2.f32 %v1731_v17 }
 0x1f3   : > { %1831 = vpow2.f32 %v1732_v28 }
 0x1f8   : > { %v1830_v16 = vpop.eup %1829 }
 0x1f9   : > { %v1832_v62 = vpop.eup %1831  ;;  %v1441_v23 = vadd.f32 1.0, %v1830_v16 }
 0x1fa   : > { %v1442_v50 = vadd.f32 1.0, %v1832_v62 }
 0x1fb   : > { %1833 = vrcp.f32 %v1441_v23  ;;  %vm1448_vm4 = vweird.f32 %v1441_v23  ;;  %v1454_v49 = vand.u32 2147483648, %v1441_v23  ;;  %v1452_v7 = vand.u32 2147483647, %v1441_v23 }
 0x1fc   : > { %1835 = vrcp.f32 %v1442_v50  ;;  %v1469_v51 = vand.u32 2147483648, %v1442_v50  ;;  %v1467_v46 = vand.u32 2147483647, %v1442_v50  ;;  %vm1463_vm6 = vweird.f32 %v1442_v50 }
 0x1fd   : > { %v1455_v3 = vor.u32 1.1754944e-38, %v1454_v49  ;;  %vm1453_vm9 = vcmp.eq.f32.partialorder %v1452_v7, 8.507059e+37 }
 0x1fe   : > { %v1470_v36 = vor.u32 1.1754944e-38, %v1469_v51  ;;  %vm1468_vm8 = vcmp.eq.f32.partialorder %v1467_v46, 8.507059e+37 }
 0x201   : > { %v1834_v6 = vpop.eup %1833 }
 0x202   : > { %v1836_v29 = vpop.eup %1835  ;;  %v1444_v2 = vmul.f32 %v1834_v6, %v1441_v23  ;;  %vm1449_vm15 = vweird.f32 %v1834_v6 }
 0x203   : > { %v1459_v39 = vmul.f32 %v1836_v29, %v1442_v50  ;;  %vm1464_vm3 = vweird.f32 %v1836_v29  ;;  %vm1450_vm5 = vmor %vm1448_vm4, %vm1449_vm15 }
 0x204   : > { %v1445_v14 = vsub.f32 1.0, %v1444_v2  ;;  %vm1465_vm7 = vmor %vm1463_vm6, %vm1464_vm3 }
 0x205   : > { %v1460_v34 = vsub.f32 1.0, %v1459_v39 }
 0x206   : > { %v1446_v41 = vmul.f32 %v1834_v6, %v1445_v14 }
 0x207   : > { %v1461_v25 = vmul.f32 %v1836_v29, %v1460_v34 }
 0x208   : > { %v1447_v9 = vadd.f32 %v1834_v6, %v1446_v41 }
 0x209   : > { %v1462_v11 = vadd.f32 %v1836_v29, %v1461_v25 }
 0x20a   : > { %v1451_v13 = vsel %vm1450_vm5, %v1834_v6, %v1447_v9 }
 0x20b   : > { %v1466_v40 = vsel %vm1465_vm7, %v1836_v29, %v1462_v11  ;;  %v1456_v52 = vsel %vm1453_vm9, %v1455_v3, %v1451_v13 }
 0x20c   : > { %v1471_v20 = vsel %vm1468_vm8, %v1470_v36, %v1466_v40 }
 0x20d   : > { %v1475_v1 = vrot.slane %v1471_v20, 7 }
 0x20f   : > { %v1476_v42 = vsel %vm305_vm1, %v1456_v52, %v1475_v1 }
 0x210   : > { %1478 = vst.msk [vmem:[#allocation3] sm:$0x3] %vm2183_vm2, %v1476_v42 }
 0x217   : > { %v1479_v60 = vld [vmem:[#allocation3] sm:$0x3] }
 0x218   : > { %v1482_v15 = vperm.slane %v1479_v60, 1  ;;  %v1481_v12 = vperm.slane %v1479_v60, 0 }
 0x21a   : > { %v1487_v61 = vrot.slane %v1482_v15, 4 }
 0x21c   : > { %v1488_v19 = vsel %vm266_vm0, %v1481_v12, %v1487_v61 }
 0x21d   : > { %v1490_v33 = vmul.f32 %v1488_v19, %v1486_v27 }
 0x21f   : > { %1493 = vst [vmem:[%s258_s17] sm:$0xff] %v1490_v33 }
 0x220   : > { %1969 = shalt.err (!%p1966_p11)
}
 0x221   : > { %1754 = dma.vmem_to_hbm [thread:$0]  (%p2130_p3), %s1509_s22, 128, %s1511_s20, %s1495_s10  }
 0x222 PF: > { %s3212_s8 = sld [smem:[#allocation17_spill]] }
 0x223   : > { %s3214_s21 = sld [smem:[#allocation20_spill]] }
 0x228   : > { %s1522_s1 = sand.u32 1, %s3212_s8  }
 0x229   : > { %p3215_p12 = scmp.ge.s32.totalorder %s3214_s21, 2  ;;  %s1523_s18 = scalar_lea.sflag [#allocation6], %s1522_s1 }
 0x22b   : > { %p1771_p13 = pnand %p3215_p12, %p2093_p6 }
 0x22d   : > { %p1772_p0 = pneg %p1771_p13 }
 0x22f   : > { %1999 = dma.done.wait (%p1772_p0), %s1523_s18, 128  }
 0x230   : > { %2001 = vsyncadd (%p1772_p0), %s1523_s18, 4294967168  ;;  %s3216_s18 = sld [smem:[#allocation23_spill]] }
 0x231   : > { %s3217_s15 = sld [smem:[#allocation18_spill]] }
 0x232   : > { %s3218_s16 = sld [smem:[#allocation19_spill]] }
 0x233   : > { %s3219_s17 = sld [smem:[#allocation24_spill]] }
 0x236   : > { %p19_p5 = scmp.ge.s32.totalorder %s3216_s18, 4  }
 0x238   :  { %21 = sbr.rel (!%p19_p5) target bundleno = 13 (0xd), region = 108 }
 0x23d   :  { %1529 = vsyncpa [#allocation5], 1 }
 0x23e   :  { %1531 = vsyncpa [#allocation5 + $0x1], 1 }
 0x23f   :  { %1532 = vsyncpa [#allocation10], 1 }
 0x240   :  { %1533 = vsyncpa [#allocation6], 1 }
 0x241   :  { %1535 = vsyncpa [#allocation6 + $0x1], 1 }
 0x242   :  { %1536 = vsyncpa [#allocation7], 1 }
 0x243   :  { %1538 = vsyncpa [#allocation7 + $0x1], 1 }

</bundles_post_ra>
